<compile_context>
chip_gen: v7x
topology: tpu7x:2x2x1
jax: 0.10.0
libtpu: 0.0.40
codegen_flags: <defaults>
</compile_context>

<pallas_src>
import functools

import jax
import jax.numpy as jnp
from jax import lax
from jax.experimental import pallas as pl
from jax.experimental.pallas import tpu as pltpu


_NEG = -3.0e38   # maxpool pad value; every 3x3/stride-2/pad-1 window contains
                 # at least one real element, so it can never leak out.


# --------------------------------------------------------------------------
# fused kernel: one batch element per grid step, everything VMEM-resident
# --------------------------------------------------------------------------
def _impala_block_kernel(x_ref, w0_ref, wr_ref, b0_ref, br_ref, o_ref,
                         xpad_ref, mpad_ref, rpad_ref, *, H, W, Cin, C):
    f32, bf16 = jnp.float32, jnp.bfloat16
    WC = W * C
    neg = jnp.float32(_NEG)

    def band_conv(pad_ref, step, w_ref, base, bias):
        """3x3 conv as 3 row-banded MXU matmuls (one per ky tap).

        pad_ref rows step*dy : step*dy+H hold the ky=dy input rows (fused
        (cols, channels) on lanes, zero halo); w_ref[base+dy] is the packed
        ((W+pad)*ci, W*C) bf16 band matrix.  Accumulator starts from the
        first tap's dot + bias (no zeros materialization)."""
        acc = jnp.dot(pad_ref[0:H, :].astype(bf16), w_ref[base],
                      preferred_element_type=f32) + bias
        for dy in (1, 2):
            acc = acc + jnp.dot(pad_ref[step * dy:step * dy + H, :].astype(bf16),
                                w_ref[base + dy],
                                preferred_element_type=f32)
        return acc                                            # (H, W*C) f32

    # ---- stage 1: self.conv (3x3, stride 1, pad 1) --------------------------
    # zero halo strips only; the centre store never touches them.
    xpad_ref[0:1, :] = jnp.zeros((1, (W + 2) * Cin), f32)
    xpad_ref[H + 1:H + 2, :] = jnp.zeros((1, (W + 2) * Cin), f32)
    xpad_ref[1:H + 1, 0:Cin] = jnp.zeros((H, Cin), f32)
    xpad_ref[1:H + 1, (W + 1) * Cin:] = jnp.zeros((H, Cin), f32)
    xpad_ref[1:H + 1, Cin:(W + 1) * Cin] = x_ref[0]
    c0 = band_conv(xpad_ref, 1, w0_ref, 0, b0_ref[...])      # (H, W*C) f32

    # ---- stage 2: MaxPool2d(3, stride 2, pad 1), exact f32 ------------------
    # Dense stride-1 3x3 max; the stride-2 subsample is *not* materialized:
    # the real pooled pixel (i, j) lives at (row 2i, fused col 2j*C) and the
    # residual-conv band weights only read those even positions.
    mpad_ref[0:1, :] = jnp.full((1, (W + 2) * C), neg, f32)
    mpad_ref[H + 1:H + 2, :] = jnp.full((1, (W + 2) * C), neg, f32)
    mpad_ref[1:H + 1, 0:C] = jnp.full((H, C), neg, f32)
    mpad_ref[1:H + 1, (W + 1) * C:] = jnp.full((H, C), neg, f32)
    mpad_ref[1:H + 1, C:(W + 1) * C] = c0
    rmax = jnp.maximum(jnp.maximum(mpad_ref[0:H, :], mpad_ref[1:H + 1, :]),
                       mpad_ref[2:H + 2, :])                  # (H, (W+2)*C)
    h = jnp.maximum(jnp.maximum(rmax[:, 0:WC], rmax[:, C:C + WC]),
                    rmax[:, 2 * C:2 * C + WC])                # (H, W*C) f32

    # ---- stages 3/4: two ResidualBlocks in the even-embedded layout ---------
    # rpad has a 2-row / 2-col zero halo so tap dy reads rows 2*dy : 2*dy+H.
    rpad_ref[0:2, :] = jnp.zeros((2, (W + 4) * C), f32)
    rpad_ref[H + 2:H + 4, :] = jnp.zeros((2, (W + 4) * C), f32)
    rpad_ref[2:H + 2, 0:2 * C] = jnp.zeros((H, 2 * C), f32)
    rpad_ref[2:H + 2, (W + 2) * C:] = jnp.zeros((H, 2 * C), f32)
    for blk in range(2):
        i1, i2 = 2 * blk, 2 * blk + 1
        rpad_ref[2:H + 2, 2 * C:(W + 2) * C] = jnp.maximum(h, 0.0)
        r = band_conv(rpad_ref, 2, wr_ref, 3 * i1, br_ref[i1:i1 + 1, :])
        rpad_ref[2:H + 2, 2 * C:(W + 2) * C] = jnp.maximum(r, 0.0)
        h = band_conv(rpad_ref, 2, wr_ref, 3 * i2, br_ref[i2:i2 + 1, :]) + h

    o_ref[0] = h                                              # lane-dense store


# --------------------------------------------------------------------------
# weight packing (done ONCE, outside the hot path)
# --------------------------------------------------------------------------
def _band_weight_dense(w_hwio, n_cols):
    """(3,3,ci,co) -> (3, (n_cols+2)*ci, n_cols*co) stride-1 band matrices."""
    _, _, ci, co = w_hwio.shape
    p = jnp.arange(n_cols + 2)[:, None]                   # padded input col
    w = jnp.arange(n_cols)[None, :]                       # output col
    sel = jnp.stack([(p == w + dx) for dx in range(3)]).astype(w_hwio.dtype)
    bw = jnp.einsum("dpw,kdio->kpiwo", sel, w_hwio)
    return bw.reshape(3, (n_cols + 2) * ci, n_cols * co)


def _band_weight_strided(w_hwio, n_out):
    """Band matrices that read/write the even-embedded pooled layout.

    Input col j of the pooled map lives at embedded col 2j (padded by 2 each
    side, width (2*n_out+4)*ci); output col j is written at fused col 2j*co
    (odd output columns are all-zero)."""
    _, _, ci, co = w_hwio.shape
    emb = 2 * n_out
    q = jnp.arange(emb + 4)[:, None]                      # padded embedded in col
    j = jnp.arange(n_out)[None, :]                        # pooled output col
    sel = jnp.stack([(q == 2 * j + 2 * dx) for dx in range(3)]).astype(w_hwio.dtype)
    bw = jnp.einsum("dqj,kdio->kqijo", sel, w_hwio)       # (3, emb+4, ci, n_out, co)
    bw = bw.reshape(3, (emb + 4) * ci, n_out, co)
    full = jnp.zeros((3, (emb + 4) * ci, emb, co), w_hwio.dtype)
    full = full.at[:, :, 0::2, :].set(bw)
    return full.reshape(3, (emb + 4) * ci, emb * co)


def _embed_bias(b, n_out):
    """(co,) -> (2*n_out*co,) with the bias only at even embedded columns."""
    emb = 2 * n_out
    t = jnp.zeros((emb, b.shape[0]), b.dtype)
    t = t.at[0::2, :].set(jnp.broadcast_to(b, (n_out, b.shape[0])))
    return t.reshape(emb * b.shape[0])


def pack_impala_params(params, W):
    """Pack all 5 convs into banded bf16 matrices + tiled f32 biases."""
    assert W % 2 == 0
    w0, b0 = params["conv"]
    Wo = W // 2
    res_keys = ("res1_c1", "res1_c2", "res2_c1", "res2_c2")
    w0b = _band_weight_dense(w0, W).astype(jnp.bfloat16)          # (3,(W+2)*Cin,W*C)
    wrb = jnp.concatenate(
        [_band_weight_strided(params[k][0], Wo) for k in res_keys],
        axis=0).astype(jnp.bfloat16)                              # (12,(W+4)*C,W*C)
    b0t = jnp.tile(b0, W)[None, :].astype(jnp.float32)            # (1, W*C)
    brt = jnp.stack([_embed_bias(params[k][1], Wo)
                     for k in res_keys]).astype(jnp.float32)      # (4, W*C)
    return {"w0": w0b, "wr": wrb, "b0": b0t, "br": brt}


# --------------------------------------------------------------------------
# wrapper: NCHW interface, one pallas_call
# --------------------------------------------------------------------------
@jax.jit
def impala_block_pallas(x_nchw, packed):
    w0b, wrb, b0t, brt = packed["w0"], packed["wr"], packed["b0"], packed["br"]
    B, Cin, H, W = x_nchw.shape
    assert H % 2 == 0 and W % 2 == 0
    C = b0t.shape[1] // W
    assert w0b.shape == (3, (W + 2) * Cin, W * C)
    assert wrb.shape == (12, (W + 4) * C, W * C)

    # NCHW -> lane-dense (B, H, W*Cin).  TODO(synk): the NCHW transpose is
    # kept to honor the PyTorch interface; an NHWC caller would skip it.
    x = jnp.transpose(x_nchw, (0, 2, 3, 1)).reshape(B, H, W * Cin)

    kernel = functools.partial(_impala_block_kernel, H=H, W=W, Cin=Cin, C=C)
    out_e = pl.pallas_call(
        kernel,
        out_shape=jax.ShapeDtypeStruct((B, H, W * C), jnp.float32),
        grid=(B,),
        in_specs=[
            pl.BlockSpec((1, H, W * Cin), lambda i: (i, 0, 0)),
            pl.BlockSpec((3, (W + 2) * Cin, W * C), lambda i: (0, 0, 0)),
            pl.BlockSpec((12, (W + 4) * C, W * C), lambda i: (0, 0, 0)),
            pl.BlockSpec((1, W * C), lambda i: (0, 0)),
            pl.BlockSpec((4, W * C), lambda i: (0, 0)),
        ],
        out_specs=pl.BlockSpec((1, H, W * C), lambda i: (i, 0, 0)),
        scratch_shapes=[
            pltpu.VMEM((H + 2, (W + 2) * Cin), jnp.float32),   # conv1 padded in
            pltpu.VMEM((H + 2, (W + 2) * C), jnp.float32),     # maxpool padded in
            pltpu.VMEM((H + 4, (W + 4) * C), jnp.float32),     # res-conv padded in
        ],
        compiler_params=pltpu.CompilerParams(
            dimension_semantics=("parallel",)),
    )(x, w0b, wrb, b0t, brt)

    # kernel output is even-embedded: real pooled pixel (i, j, c) at
    # (row 2i, fused col 2j*C + c).  Strip + back to NCHW (free glue).
    out = out_e.reshape(B, H, W, C)[:, ::2, ::2, :]
    return jnp.transpose(out, (0, 3, 1, 2))


# --------------------------------------------------------------------------
# deterministic synthetic parameters (PyTorch-like uniform bounds)
# --------------------------------------------------------------------------
def init_impala_params(key, cin, cout):
    ks = jax.random.split(key, 10)

    def conv_param(kw, kb, ci, co):
        bound = 1.0 / jnp.sqrt(ci * 9.0)
        w = jax.random.uniform(kw, (3, 3, ci, co), jnp.float32, -bound, bound)
        b = jax.random.uniform(kb, (co,), jnp.float32, -bound, bound)
        return w, b

    return {
        "conv":    conv_param(ks[0], ks[1], cin, cout),
        "res1_c1": conv_param(ks[2], ks[3], cout, cout),
        "res1_c2": conv_param(ks[4], ks[5], cout, cout),
        "res2_c1": conv_param(ks[6], ks[7], cout, cout),
        "res2_c2": conv_param(ks[8], ks[9], cout, cout),
    }


# --------------------------------------------------------------------------
# pure-JAX reference (correctness check only)
# --------------------------------------------------------------------------
def impala_block_ref(x_nchw, p):
    x = jnp.transpose(x_nchw, (0, 2, 3, 1))

    def conv(x, wb):
        w, b = wb
        y = lax.conv_general_dilated(
            x, w, (1, 1), ((1, 1), (1, 1)),
            dimension_numbers=("NHWC", "HWIO", "NHWC"))
        return y + b

    def maxpool(x):
        return lax.reduce_window(
            x, -jnp.inf, lax.max,
            (1, 3, 3, 1), (1, 2, 2, 1),
            ((0, 0), (1, 1), (1, 1), (0, 0)))

    def resblock(x, wb1, wb2):
        out = jnp.maximum(x, 0.0)
        out = conv(out, wb1)
        out = jnp.maximum(out, 0.0)
        out = conv(out, wb2)
        return out + x

    h = conv(x, p["conv"])
    h = maxpool(h)
    h = resblock(h, p["res1_c1"], p["res1_c2"])
    h = resblock(h, p["res2_c1"], p["res2_c2"])
    return jnp.transpose(h, (0, 3, 1, 2))


if __name__ == "__main__":
    key = jax.random.PRNGKey(0)
    kx, kp = jax.random.split(key)

    B, Cin, Cout, H, W = 2, 4, 8, 16, 16
    x = jax.random.normal(kx, (B, Cin, H, W), jnp.float32)     # NCHW like PyTorch
    params = init_impala_params(kp, Cin, Cout)
    packed = pack_impala_params(params, W)                     # one-time packing

    out = jax.block_until_ready(impala_block_pallas(x, packed))
    assert out.shape == (B, Cout, H // 2, W // 2), out.shape

    ref = impala_block_ref(x, params)
    err = float(jnp.max(jnp.abs(out - ref)))
    # bf16 matmul operands (f32 accumulate); structural errors would be O(0.1..1)
    assert err < 2e-2, err

    print("KERNEL_OK")
</pallas_src>

<mosaic_0001>
module attributes {stable_mosaic.version = 11 : i64} {
  func.func @_impala_block_kernel(%arg0: i32, %arg1: memref<1x16x64xf32, #tpu.memory_space<vmem>>, %arg2: memref<3x72x128xbf16, #tpu.memory_space<vmem>>, %arg3: memref<12x160x128xbf16, #tpu.memory_space<vmem>>, %arg4: memref<1x128xf32, #tpu.memory_space<vmem>>, %arg5: memref<4x128xf32, #tpu.memory_space<vmem>>, %arg6: memref<1x16x128xf32, #tpu.memory_space<vmem>>, %arg7: memref<18x72xf32, #tpu.memory_space<vmem>>, %arg8: memref<18x144xf32, #tpu.memory_space<vmem>>, %arg9: memref<20x160xf32, #tpu.memory_space<vmem>>) attributes {dimension_semantics = [#tpu.dimension_semantics<parallel>], iteration_bounds = array<i64: 2>, scalar_prefetch = 0 : i64, scratch_operands = 3 : i64, tpu.core_type = #tpu.core_type<tc>, window_params = [{transform_indices = @transform_0, window_bounds = array<i64: 1, 16, 64>}, {pipeline_mode = #tpu.pipeline_mode<synchronous>, transform_indices = @transform_1, window_bounds = array<i64: 3, 72, 128>}, {pipeline_mode = #tpu.pipeline_mode<synchronous>, transform_indices = @transform_2, window_bounds = array<i64: 12, 160, 128>}, {pipeline_mode = #tpu.pipeline_mode<synchronous>, transform_indices = @transform_3, window_bounds = array<i64: 1, 128>}, {pipeline_mode = #tpu.pipeline_mode<synchronous>, transform_indices = @transform_4, window_bounds = array<i64: 4, 128>}, {transform_indices = @transform_5, window_bounds = array<i64: 1, 16, 128>}]} {
    %cst = arith.constant 0.000000e+00 : f32
    %0 = vector.broadcast %cst : f32 to vector<1x72xf32>
    %c0 = arith.constant 0 : index
    %c0_0 = arith.constant 0 : index
    %1 = vector.load %arg7[%c0, %c0_0] : memref<18x72xf32, #tpu.memory_space<vmem>>, vector<1x72xf32>
    tpu.vector_store %arg7[%c0, %c0_0], %0 {strides = array<i32>} : memref<18x72xf32, #tpu.memory_space<vmem>>, vector<1x72xf32>,
    %cst_1 = arith.constant 0.000000e+00 : f32
    %2 = vector.broadcast %cst_1 : f32 to vector<1x72xf32>
    %c17 = arith.constant 17 : index
    %c0_2 = arith.constant 0 : index
    %3 = vector.load %arg7[%c17, %c0_2] : memref<18x72xf32, #tpu.memory_space<vmem>>, vector<1x72xf32>
    tpu.vector_store %arg7[%c17, %c0_2], %2 {strides = array<i32>} : memref<18x72xf32, #tpu.memory_space<vmem>>, vector<1x72xf32>,
    %cst_3 = arith.constant 0.000000e+00 : f32
    %4 = vector.broadcast %cst_3 : f32 to vector<16x4xf32>
    %c1 = arith.constant 1 : index
    %c0_4 = arith.constant 0 : index
    %5 = vector.load %arg7[%c1, %c0_4] : memref<18x72xf32, #tpu.memory_space<vmem>>, vector<16x4xf32>
    tpu.vector_store %arg7[%c1, %c0_4], %4 {strides = array<i32>} : memref<18x72xf32, #tpu.memory_space<vmem>>, vector<16x4xf32>,
    %cst_5 = arith.constant 0.000000e+00 : f32
    %6 = vector.broadcast %cst_5 : f32 to vector<16x4xf32>
    %c1_6 = arith.constant 1 : index
    %c68 = arith.constant 68 : index
    %7 = vector.load %arg7[%c1_6, %c68] : memref<18x72xf32, #tpu.memory_space<vmem>>, vector<16x4xf32>
    tpu.vector_store %arg7[%c1_6, %c68], %6 {strides = array<i32>} : memref<18x72xf32, #tpu.memory_space<vmem>>, vector<16x4xf32>,
    %c0_7 = arith.constant 0 : index
    %c0_8 = arith.constant 0 : index
    %c0_9 = arith.constant 0 : index
    %8 = vector.load %arg1[%c0_7, %c0_8, %c0_9] : memref<1x16x64xf32, #tpu.memory_space<vmem>>, vector<1x16x64xf32>
    %9 = vector.shape_cast %8 : vector<1x16x64xf32> to vector<16x64xf32>
    %c1_10 = arith.constant 1 : index
    %c4 = arith.constant 4 : index
    %10 = vector.load %arg7[%c1_10, %c4] : memref<18x72xf32, #tpu.memory_space<vmem>>, vector<16x64xf32>
    tpu.vector_store %arg7[%c1_10, %c4], %9 {strides = array<i32>} : memref<18x72xf32, #tpu.memory_space<vmem>>, vector<16x64xf32>,
    %c0_11 = arith.constant 0 : index
    %c0_12 = arith.constant 0 : index
    %11 = vector.load %arg4[%c0_11, %c0_12] : memref<1x128xf32, #tpu.memory_space<vmem>>, vector<1x128xf32>
    %c0_13 = arith.constant 0 : index
    %c0_14 = arith.constant 0 : index
    %12 = vector.load %arg7[%c0_13, %c0_14] : memref<18x72xf32, #tpu.memory_space<vmem>>, vector<16x72xf32>
    %13 = arith.truncf %12 : vector<16x72xf32> to vector<16x72xbf16>
    %c0_15 = arith.constant 0 : index
    %c0_16 = arith.constant 0 : index
    %c0_17 = arith.constant 0 : index
    %14 = vector.load %arg2[%c0_15, %c0_16, %c0_17] : memref<3x72x128xbf16, #tpu.memory_space<vmem>>, vector<1x72x128xbf16>
    %15 = vector.shape_cast %14 : vector<1x72x128xbf16> to vector<72x128xbf16>
    %cst_18 = arith.constant dense<0.000000e+00> : vector<16x128xf32>
    %16 = tpu.matmul %13, %15, %cst_18 {dimension_numbers = #tpu.dot_dimension_numbers<[1], [0], [0], [1], [0, 0, 1, 1], [], []>} : vector<16x72xbf16>, vector<72x128xbf16>, vector<16x128xf32> -> vector<16x128xf32>
    %17 = vector.broadcast %11 : vector<1x128xf32> to vector<16x128xf32>
    %18 = arith.addf %16, %17 : vector<16x128xf32>
    %c1_19 = arith.constant 1 : index
    %c0_20 = arith.constant 0 : index
    %19 = vector.load %arg7[%c1_19, %c0_20] : memref<18x72xf32, #tpu.memory_space<vmem>>, vector<16x72xf32>
    %20 = arith.truncf %19 : vector<16x72xf32> to vector<16x72xbf16>
    %c1_21 = arith.constant 1 : index
    %c0_22 = arith.constant 0 : index
    %c0_23 = arith.constant 0 : index
    %21 = vector.load %arg2[%c1_21, %c0_22, %c0_23] : memref<3x72x128xbf16, #tpu.memory_space<vmem>>, vector<1x72x128xbf16>
    %22 = vector.shape_cast %21 : vector<1x72x128xbf16> to vector<72x128xbf16>
    %cst_24 = arith.constant dense<0.000000e+00> : vector<16x128xf32>
    %23 = tpu.matmul %20, %22, %cst_24 {dimension_numbers = #tpu.dot_dimension_numbers<[1], [0], [0], [1], [0, 0, 1, 1], [], []>} : vector<16x72xbf16>, vector<72x128xbf16>, vector<16x128xf32> -> vector<16x128xf32>
    %24 = arith.addf %18, %23 : vector<16x128xf32>
    %c2 = arith.constant 2 : index
    %c0_25 = arith.constant 0 : index
    %25 = vector.load %arg7[%c2, %c0_25] : memref<18x72xf32, #tpu.memory_space<vmem>>, vector<16x72xf32>
    %26 = arith.truncf %25 : vector<16x72xf32> to vector<16x72xbf16>
    %c2_26 = arith.constant 2 : index
    %c0_27 = arith.constant 0 : index
    %c0_28 = arith.constant 0 : index
    %27 = vector.load %arg2[%c2_26, %c0_27, %c0_28] : memref<3x72x128xbf16, #tpu.memory_space<vmem>>, vector<1x72x128xbf16>
    %28 = vector.shape_cast %27 : vector<1x72x128xbf16> to vector<72x128xbf16>
    %cst_29 = arith.constant dense<0.000000e+00> : vector<16x128xf32>
    %29 = tpu.matmul %26, %28, %cst_29 {dimension_numbers = #tpu.dot_dimension_numbers<[1], [0], [0], [1], [0, 0, 1, 1], [], []>} : vector<16x72xbf16>, vector<72x128xbf16>, vector<16x128xf32> -> vector<16x128xf32>
    %30 = arith.addf %24, %29 : vector<16x128xf32>
    %cst_30 = arith.constant -3.000000e+38 : f32
    %31 = vector.broadcast %cst_30 : f32 to vector<1x144xf32>
    %c0_31 = arith.constant 0 : index
    %c0_32 = arith.constant 0 : index
    %32 = vector.load %arg8[%c0_31, %c0_32] : memref<18x144xf32, #tpu.memory_space<vmem>>, vector<1x144xf32>
    tpu.vector_store %arg8[%c0_31, %c0_32], %31 {strides = array<i32>} : memref<18x144xf32, #tpu.memory_space<vmem>>, vector<1x144xf32>,
    %cst_33 = arith.constant -3.000000e+38 : f32
    %33 = vector.broadcast %cst_33 : f32 to vector<1x144xf32>
    %c17_34 = arith.constant 17 : index
    %c0_35 = arith.constant 0 : index
    %34 = vector.load %arg8[%c17_34, %c0_35] : memref<18x144xf32, #tpu.memory_space<vmem>>, vector<1x144xf32>
    tpu.vector_store %arg8[%c17_34, %c0_35], %33 {strides = array<i32>} : memref<18x144xf32, #tpu.memory_space<vmem>>, vector<1x144xf32>,
    %cst_36 = arith.constant -3.000000e+38 : f32
    %35 = vector.broadcast %cst_36 : f32 to vector<16x8xf32>
    %c1_37 = arith.constant 1 : index
    %c0_38 = arith.constant 0 : index
    %36 = vector.load %arg8[%c1_37, %c0_38] : memref<18x144xf32, #tpu.memory_space<vmem>>, vector<16x8xf32>
    tpu.vector_store %arg8[%c1_37, %c0_38], %35 {strides = array<i32>} : memref<18x144xf32, #tpu.memory_space<vmem>>, vector<16x8xf32>,
    %cst_39 = arith.constant -3.000000e+38 : f32
    %37 = vector.broadcast %cst_39 : f32 to vector<16x8xf32>
    %c1_40 = arith.constant 1 : index
    %c136 = arith.constant 136 : index
    %38 = vector.load %arg8[%c1_40, %c136] : memref<18x144xf32, #tpu.memory_space<vmem>>, vector<16x8xf32>
    tpu.vector_store %arg8[%c1_40, %c136], %37 {strides = array<i32>} : memref<18x144xf32, #tpu.memory_space<vmem>>, vector<16x8xf32>,
    %c1_41 = arith.constant 1 : index
    %c8 = arith.constant 8 : index
    %39 = vector.load %arg8[%c1_41, %c8] : memref<18x144xf32, #tpu.memory_space<vmem>>, vector<16x128xf32>
    tpu.vector_store %arg8[%c1_41, %c8], %30 {strides = array<i32>} : memref<18x144xf32, #tpu.memory_space<vmem>>, vector<16x128xf32>,
    %c0_42 = arith.constant 0 : index
    %c0_43 = arith.constant 0 : index
    %40 = vector.load %arg8[%c0_42, %c0_43] : memref<18x144xf32, #tpu.memory_space<vmem>>, vector<16x144xf32>
    %c1_44 = arith.constant 1 : index
    %c0_45 = arith.constant 0 : index
    %41 = vector.load %arg8[%c1_44, %c0_45] : memref<18x144xf32, #tpu.memory_space<vmem>>, vector<16x144xf32>
    %42 = arith.maximumf %40, %41 : vector<16x144xf32>
    %c2_46 = arith.constant 2 : index
    %c0_47 = arith.constant 0 : index
    %43 = vector.load %arg8[%c2_46, %c0_47] : memref<18x144xf32, #tpu.memory_space<vmem>>, vector<16x144xf32>
    %44 = arith.maximumf %42, %43 : vector<16x144xf32>
    %45 = vector.extract_strided_slice %44 {offsets = [0, 0], sizes = [16, 128], strides = [1, 1]} : vector<16x144xf32> to vector<16x128xf32>
    %46 = vector.extract_strided_slice %44 {offsets = [0, 8], sizes = [16, 128], strides = [1, 1]} : vector<16x144xf32> to vector<16x128xf32>
    %47 = arith.maximumf %45, %46 : vector<16x128xf32>
    %48 = vector.extract_strided_slice %44 {offsets = [0, 16], sizes = [16, 128], strides = [1, 1]} : vector<16x144xf32> to vector<16x128xf32>
    %49 = arith.maximumf %47, %48 : vector<16x128xf32>
    %cst_48 = arith.constant 0.000000e+00 : f32
    %50 = vector.broadcast %cst_48 : f32 to vector<2x160xf32>
    %c0_49 = arith.constant 0 : index
    %c0_50 = arith.constant 0 : index
    %51 = vector.load %arg9[%c0_49, %c0_50] : memref<20x160xf32, #tpu.memory_space<vmem>>, vector<2x160xf32>
    tpu.vector_store %arg9[%c0_49, %c0_50], %50 {strides = array<i32>} : memref<20x160xf32, #tpu.memory_space<vmem>>, vector<2x160xf32>,
    %cst_51 = arith.constant 0.000000e+00 : f32
    %52 = vector.broadcast %cst_51 : f32 to vector<2x160xf32>
    %c18 = arith.constant 18 : index
    %c0_52 = arith.constant 0 : index
    %53 = vector.load %arg9[%c18, %c0_52] : memref<20x160xf32, #tpu.memory_space<vmem>>, vector<2x160xf32>
    tpu.vector_store %arg9[%c18, %c0_52], %52 {strides = array<i32>} : memref<20x160xf32, #tpu.memory_space<vmem>>, vector<2x160xf32>,
    %cst_53 = arith.constant 0.000000e+00 : f32
    %54 = vector.broadcast %cst_53 : f32 to vector<16x16xf32>
    %c2_54 = arith.constant 2 : index
    %c0_55 = arith.constant 0 : index
    %55 = vector.load %arg9[%c2_54, %c0_55] : memref<20x160xf32, #tpu.memory_space<vmem>>, vector<16x16xf32>
    tpu.vector_store %arg9[%c2_54, %c0_55], %54 {strides = array<i32>} : memref<20x160xf32, #tpu.memory_space<vmem>>, vector<16x16xf32>,
    %cst_56 = arith.constant 0.000000e+00 : f32
    %56 = vector.broadcast %cst_56 : f32 to vector<16x16xf32>
    %c2_57 = arith.constant 2 : index
    %c144 = arith.constant 144 : index
    %57 = vector.load %arg9[%c2_57, %c144] : memref<20x160xf32, #tpu.memory_space<vmem>>, vector<16x16xf32>
    tpu.vector_store %arg9[%c2_57, %c144], %56 {strides = array<i32>} : memref<20x160xf32, #tpu.memory_space<vmem>>, vector<16x16xf32>,
    %cst_58 = arith.constant 0.000000e+00 : f32
    %58 = vector.broadcast %cst_58 : f32 to vector<16x128xf32>
    %59 = arith.maximumf %49, %58 : vector<16x128xf32>
    %c2_59 = arith.constant 2 : index
    %c16 = arith.constant 16 : index
    %60 = vector.load %arg9[%c2_59, %c16] : memref<20x160xf32, #tpu.memory_space<vmem>>, vector<16x128xf32>
    tpu.vector_store %arg9[%c2_59, %c16], %59 {strides = array<i32>} : memref<20x160xf32, #tpu.memory_space<vmem>>, vector<16x128xf32>,
    %c0_60 = arith.constant 0 : index
    %c0_61 = arith.constant 0 : index
    %61 = vector.load %arg5[%c0_60, %c0_61] : memref<4x128xf32, #tpu.memory_space<vmem>>, vector<1x128xf32>
    %c0_62 = arith.constant 0 : index
    %c0_63 = arith.constant 0 : index
    %62 = vector.load %arg9[%c0_62, %c0_63] : memref<20x160xf32, #tpu.memory_space<vmem>>, vector<16x160xf32>
    %63 = arith.truncf %62 : vector<16x160xf32> to vector<16x160xbf16>
    %c0_64 = arith.constant 0 : index
    %c0_65 = arith.constant 0 : index
    %c0_66 = arith.constant 0 : index
    %64 = vector.load %arg3[%c0_64, %c0_65, %c0_66] : memref<12x160x128xbf16, #tpu.memory_space<vmem>>, vector<1x160x128xbf16>
    %65 = vector.shape_cast %64 : vector<1x160x128xbf16> to vector<160x128xbf16>
    %cst_67 = arith.constant dense<0.000000e+00> : vector<16x128xf32>
    %66 = tpu.matmul %63, %65, %cst_67 {dimension_numbers = #tpu.dot_dimension_numbers<[1], [0], [0], [1], [0, 0, 1, 1], [], []>} : vector<16x160xbf16>, vector<160x128xbf16>, vector<16x128xf32> -> vector<16x128xf32>
    %67 = vector.broadcast %61 : vector<1x128xf32> to vector<16x128xf32>
    %68 = arith.addf %66, %67 : vector<16x128xf32>
    %c2_68 = arith.constant 2 : index
    %c0_69 = arith.constant 0 : index
    %69 = vector.load %arg9[%c2_68, %c0_69] : memref<20x160xf32, #tpu.memory_space<vmem>>, vector<16x160xf32>
    %70 = arith.truncf %69 : vector<16x160xf32> to vector<16x160xbf16>
    %c1_70 = arith.constant 1 : index
    %c0_71 = arith.constant 0 : index
    %c0_72 = arith.constant 0 : index
    %71 = vector.load %arg3[%c1_70, %c0_71, %c0_72] : memref<12x160x128xbf16, #tpu.memory_space<vmem>>, vector<1x160x128xbf16>
    %72 = vector.shape_cast %71 : vector<1x160x128xbf16> to vector<160x128xbf16>
    %cst_73 = arith.constant dense<0.000000e+00> : vector<16x128xf32>
    %73 = tpu.matmul %70, %72, %cst_73 {dimension_numbers = #tpu.dot_dimension_numbers<[1], [0], [0], [1], [0, 0, 1, 1], [], []>} : vector<16x160xbf16>, vector<160x128xbf16>, vector<16x128xf32> -> vector<16x128xf32>
    %74 = arith.addf %68, %73 : vector<16x128xf32>
    %c4_74 = arith.constant 4 : index
    %c0_75 = arith.constant 0 : index
    %75 = vector.load %arg9[%c4_74, %c0_75] : memref<20x160xf32, #tpu.memory_space<vmem>>, vector<16x160xf32>
    %76 = arith.truncf %75 : vector<16x160xf32> to vector<16x160xbf16>
    %c2_76 = arith.constant 2 : index
    %c0_77 = arith.constant 0 : index
    %c0_78 = arith.constant 0 : index
    %77 = vector.load %arg3[%c2_76, %c0_77, %c0_78] : memref<12x160x128xbf16, #tpu.memory_space<vmem>>, vector<1x160x128xbf16>
    %78 = vector.shape_cast %77 : vector<1x160x128xbf16> to vector<160x128xbf16>
    %cst_79 = arith.constant dense<0.000000e+00> : vector<16x128xf32>
    %79 = tpu.matmul %76, %78, %cst_79 {dimension_numbers = #tpu.dot_dimension_numbers<[1], [0], [0], [1], [0, 0, 1, 1], [], []>} : vector<16x160xbf16>, vector<160x128xbf16>, vector<16x128xf32> -> vector<16x128xf32>
    %80 = arith.addf %74, %79 : vector<16x128xf32>
    %cst_80 = arith.constant 0.000000e+00 : f32
    %81 = vector.broadcast %cst_80 : f32 to vector<16x128xf32>
    %82 = arith.maximumf %80, %81 : vector<16x128xf32>
    %c2_81 = arith.constant 2 : index
    %c16_82 = arith.constant 16 : index
    %83 = vector.load %arg9[%c2_81, %c16_82] : memref<20x160xf32, #tpu.memory_space<vmem>>, vector<16x128xf32>
    tpu.vector_store %arg9[%c2_81, %c16_82], %82 {strides = array<i32>} : memref<20x160xf32, #tpu.memory_space<vmem>>, vector<16x128xf32>,
    %c1_83 = arith.constant 1 : index
    %c0_84 = arith.constant 0 : index
    %84 = vector.load %arg5[%c1_83, %c0_84] : memref<4x128xf32, #tpu.memory_space<vmem>>, vector<1x128xf32>
    %c0_85 = arith.constant 0 : index
    %c0_86 = arith.constant 0 : index
    %85 = vector.load %arg9[%c0_85, %c0_86] : memref<20x160xf32, #tpu.memory_space<vmem>>, vector<16x160xf32>
    %86 = arith.truncf %85 : vector<16x160xf32> to vector<16x160xbf16>
    %c3 = arith.constant 3 : index
    %c0_87 = arith.constant 0 : index
    %c0_88 = arith.constant 0 : index
    %87 = vector.load %arg3[%c3, %c0_87, %c0_88] : memref<12x160x128xbf16, #tpu.memory_space<vmem>>, vector<1x160x128xbf16>
    %88 = vector.shape_cast %87 : vector<1x160x128xbf16> to vector<160x128xbf16>
    %cst_89 = arith.constant dense<0.000000e+00> : vector<16x128xf32>
    %89 = tpu.matmul %86, %88, %cst_89 {dimension_numbers = #tpu.dot_dimension_numbers<[1], [0], [0], [1], [0, 0, 1, 1], [], []>} : vector<16x160xbf16>, vector<160x128xbf16>, vector<16x128xf32> -> vector<16x128xf32>
    %90 = vector.broadcast %84 : vector<1x128xf32> to vector<16x128xf32>
    %91 = arith.addf %89, %90 : vector<16x128xf32>
    %c2_90 = arith.constant 2 : index
    %c0_91 = arith.constant 0 : index
    %92 = vector.load %arg9[%c2_90, %c0_91] : memref<20x160xf32, #tpu.memory_space<vmem>>, vector<16x160xf32>
    %93 = arith.truncf %92 : vector<16x160xf32> to vector<16x160xbf16>
    %c4_92 = arith.constant 4 : index
    %c0_93 = arith.constant 0 : index
    %c0_94 = arith.constant 0 : index
    %94 = vector.load %arg3[%c4_92, %c0_93, %c0_94] : memref<12x160x128xbf16, #tpu.memory_space<vmem>>, vector<1x160x128xbf16>
    %95 = vector.shape_cast %94 : vector<1x160x128xbf16> to vector<160x128xbf16>
    %cst_95 = arith.constant dense<0.000000e+00> : vector<16x128xf32>
    %96 = tpu.matmul %93, %95, %cst_95 {dimension_numbers = #tpu.dot_dimension_numbers<[1], [0], [0], [1], [0, 0, 1, 1], [], []>} : vector<16x160xbf16>, vector<160x128xbf16>, vector<16x128xf32> -> vector<16x128xf32>
    %97 = arith.addf %91, %96 : vector<16x128xf32>
    %c4_96 = arith.constant 4 : index
    %c0_97 = arith.constant 0 : index
    %98 = vector.load %arg9[%c4_96, %c0_97] : memref<20x160xf32, #tpu.memory_space<vmem>>, vector<16x160xf32>
    %99 = arith.truncf %98 : vector<16x160xf32> to vector<16x160xbf16>
    %c5 = arith.constant 5 : index
    %c0_98 = arith.constant 0 : index
    %c0_99 = arith.constant 0 : index
    %100 = vector.load %arg3[%c5, %c0_98, %c0_99] : memref<12x160x128xbf16, #tpu.memory_space<vmem>>, vector<1x160x128xbf16>
    %101 = vector.shape_cast %100 : vector<1x160x128xbf16> to vector<160x128xbf16>
    %cst_100 = arith.constant dense<0.000000e+00> : vector<16x128xf32>
    %102 = tpu.matmul %99, %101, %cst_100 {dimension_numbers = #tpu.dot_dimension_numbers<[1], [0], [0], [1], [0, 0, 1, 1], [], []>} : vector<16x160xbf16>, vector<160x128xbf16>, vector<16x128xf32> -> vector<16x128xf32>
    %103 = arith.addf %97, %102 : vector<16x128xf32>
    %104 = arith.addf %103, %49 : vector<16x128xf32>
    %cst_101 = arith.constant 0.000000e+00 : f32
    %105 = vector.broadcast %cst_101 : f32 to vector<16x128xf32>
    %106 = arith.maximumf %104, %105 : vector<16x128xf32>
    %c2_102 = arith.constant 2 : index
    %c16_103 = arith.constant 16 : index
    %107 = vector.load %arg9[%c2_102, %c16_103] : memref<20x160xf32, #tpu.memory_space<vmem>>, vector<16x128xf32>
    tpu.vector_store %arg9[%c2_102, %c16_103], %106 {strides = array<i32>} : memref<20x160xf32, #tpu.memory_space<vmem>>, vector<16x128xf32>,
    %c2_104 = arith.constant 2 : index
    %c0_105 = arith.constant 0 : index
    %108 = vector.load %arg5[%c2_104, %c0_105] : memref<4x128xf32, #tpu.memory_space<vmem>>, vector<1x128xf32>
    %c0_106 = arith.constant 0 : index
    %c0_107 = arith.constant 0 : index
    %109 = vector.load %arg9[%c0_106, %c0_107] : memref<20x160xf32, #tpu.memory_space<vmem>>, vector<16x160xf32>
    %110 = arith.truncf %109 : vector<16x160xf32> to vector<16x160xbf16>
    %c6 = arith.constant 6 : index
    %c0_108 = arith.constant 0 : index
    %c0_109 = arith.constant 0 : index
    %111 = vector.load %arg3[%c6, %c0_108, %c0_109] : memref<12x160x128xbf16, #tpu.memory_space<vmem>>, vector<1x160x128xbf16>
    %112 = vector.shape_cast %111 : vector<1x160x128xbf16> to vector<160x128xbf16>
    %cst_110 = arith.constant dense<0.000000e+00> : vector<16x128xf32>
    %113 = tpu.matmul %110, %112, %cst_110 {dimension_numbers = #tpu.dot_dimension_numbers<[1], [0], [0], [1], [0, 0, 1, 1], [], []>} : vector<16x160xbf16>, vector<160x128xbf16>, vector<16x128xf32> -> vector<16x128xf32>
    %114 = vector.broadcast %108 : vector<1x128xf32> to vector<16x128xf32>
    %115 = arith.addf %113, %114 : vector<16x128xf32>
    %c2_111 = arith.constant 2 : index
    %c0_112 = arith.constant 0 : index
    %116 = vector.load %arg9[%c2_111, %c0_112] : memref<20x160xf32, #tpu.memory_space<vmem>>, vector<16x160xf32>
    %117 = arith.truncf %116 : vector<16x160xf32> to vector<16x160xbf16>
    %c7 = arith.constant 7 : index
    %c0_113 = arith.constant 0 : index
    %c0_114 = arith.constant 0 : index
    %118 = vector.load %arg3[%c7, %c0_113, %c0_114] : memref<12x160x128xbf16, #tpu.memory_space<vmem>>, vector<1x160x128xbf16>
    %119 = vector.shape_cast %118 : vector<1x160x128xbf16> to vector<160x128xbf16>
    %cst_115 = arith.constant dense<0.000000e+00> : vector<16x128xf32>
    %120 = tpu.matmul %117, %119, %cst_115 {dimension_numbers = #tpu.dot_dimension_numbers<[1], [0], [0], [1], [0, 0, 1, 1], [], []>} : vector<16x160xbf16>, vector<160x128xbf16>, vector<16x128xf32> -> vector<16x128xf32>
    %121 = arith.addf %115, %120 : vector<16x128xf32>
    %c4_116 = arith.constant 4 : index
    %c0_117 = arith.constant 0 : index
    %122 = vector.load %arg9[%c4_116, %c0_117] : memref<20x160xf32, #tpu.memory_space<vmem>>, vector<16x160xf32>
    %123 = arith.truncf %122 : vector<16x160xf32> to vector<16x160xbf16>
    %c8_118 = arith.constant 8 : index
    %c0_119 = arith.constant 0 : index
    %c0_120 = arith.constant 0 : index
    %124 = vector.load %arg3[%c8_118, %c0_119, %c0_120] : memref<12x160x128xbf16, #tpu.memory_space<vmem>>, vector<1x160x128xbf16>
    %125 = vector.shape_cast %124 : vector<1x160x128xbf16> to vector<160x128xbf16>
    %cst_121 = arith.constant dense<0.000000e+00> : vector<16x128xf32>
    %126 = tpu.matmul %123, %125, %cst_121 {dimension_numbers = #tpu.dot_dimension_numbers<[1], [0], [0], [1], [0, 0, 1, 1], [], []>} : vector<16x160xbf16>, vector<160x128xbf16>, vector<16x128xf32> -> vector<16x128xf32>
    %127 = arith.addf %121, %126 : vector<16x128xf32>
    %cst_122 = arith.constant 0.000000e+00 : f32
    %128 = vector.broadcast %cst_122 : f32 to vector<16x128xf32>
    %129 = arith.maximumf %127, %128 : vector<16x128xf32>
    %c2_123 = arith.constant 2 : index
    %c16_124 = arith.constant 16 : index
    %130 = vector.load %arg9[%c2_123, %c16_124] : memref<20x160xf32, #tpu.memory_space<vmem>>, vector<16x128xf32>
    tpu.vector_store %arg9[%c2_123, %c16_124], %129 {strides = array<i32>} : memref<20x160xf32, #tpu.memory_space<vmem>>, vector<16x128xf32>,
    %c3_125 = arith.constant 3 : index
    %c0_126 = arith.constant 0 : index
    %131 = vector.load %arg5[%c3_125, %c0_126] : memref<4x128xf32, #tpu.memory_space<vmem>>, vector<1x128xf32>
    %c0_127 = arith.constant 0 : index
    %c0_128 = arith.constant 0 : index
    %132 = vector.load %arg9[%c0_127, %c0_128] : memref<20x160xf32, #tpu.memory_space<vmem>>, vector<16x160xf32>
    %133 = arith.truncf %132 : vector<16x160xf32> to vector<16x160xbf16>
    %c9 = arith.constant 9 : index
    %c0_129 = arith.constant 0 : index
    %c0_130 = arith.constant 0 : index
    %134 = vector.load %arg3[%c9, %c0_129, %c0_130] : memref<12x160x128xbf16, #tpu.memory_space<vmem>>, vector<1x160x128xbf16>
    %135 = vector.shape_cast %134 : vector<1x160x128xbf16> to vector<160x128xbf16>
    %cst_131 = arith.constant dense<0.000000e+00> : vector<16x128xf32>
    %136 = tpu.matmul %133, %135, %cst_131 {dimension_numbers = #tpu.dot_dimension_numbers<[1], [0], [0], [1], [0, 0, 1, 1], [], []>} : vector<16x160xbf16>, vector<160x128xbf16>, vector<16x128xf32> -> vector<16x128xf32>
    %137 = vector.broadcast %131 : vector<1x128xf32> to vector<16x128xf32>
    %138 = arith.addf %136, %137 : vector<16x128xf32>
    %c2_132 = arith.constant 2 : index
    %c0_133 = arith.constant 0 : index
    %139 = vector.load %arg9[%c2_132, %c0_133] : memref<20x160xf32, #tpu.memory_space<vmem>>, vector<16x160xf32>
    %140 = arith.truncf %139 : vector<16x160xf32> to vector<16x160xbf16>
    %c10 = arith.constant 10 : index
    %c0_134 = arith.constant 0 : index
    %c0_135 = arith.constant 0 : index
    %141 = vector.load %arg3[%c10, %c0_134, %c0_135] : memref<12x160x128xbf16, #tpu.memory_space<vmem>>, vector<1x160x128xbf16>
    %142 = vector.shape_cast %141 : vector<1x160x128xbf16> to vector<160x128xbf16>
    %cst_136 = arith.constant dense<0.000000e+00> : vector<16x128xf32>
    %143 = tpu.matmul %140, %142, %cst_136 {dimension_numbers = #tpu.dot_dimension_numbers<[1], [0], [0], [1], [0, 0, 1, 1], [], []>} : vector<16x160xbf16>, vector<160x128xbf16>, vector<16x128xf32> -> vector<16x128xf32>
    %144 = arith.addf %138, %143 : vector<16x128xf32>
    %c4_137 = arith.constant 4 : index
    %c0_138 = arith.constant 0 : index
    %145 = vector.load %arg9[%c4_137, %c0_138] : memref<20x160xf32, #tpu.memory_space<vmem>>, vector<16x160xf32>
    %146 = arith.truncf %145 : vector<16x160xf32> to vector<16x160xbf16>
    %c11 = arith.constant 11 : index
    %c0_139 = arith.constant 0 : index
    %c0_140 = arith.constant 0 : index
    %147 = vector.load %arg3[%c11, %c0_139, %c0_140] : memref<12x160x128xbf16, #tpu.memory_space<vmem>>, vector<1x160x128xbf16>
    %148 = vector.shape_cast %147 : vector<1x160x128xbf16> to vector<160x128xbf16>
    %cst_141 = arith.constant dense<0.000000e+00> : vector<16x128xf32>
    %149 = tpu.matmul %146, %148, %cst_141 {dimension_numbers = #tpu.dot_dimension_numbers<[1], [0], [0], [1], [0, 0, 1, 1], [], []>} : vector<16x160xbf16>, vector<160x128xbf16>, vector<16x128xf32> -> vector<16x128xf32>
    %150 = arith.addf %144, %149 : vector<16x128xf32>
    %151 = arith.addf %150, %104 : vector<16x128xf32>
    %c0_142 = arith.constant 0 : index
    %c0_143 = arith.constant 0 : index
    %c0_144 = arith.constant 0 : index
    %152 = vector.load %arg6[%c0_142, %c0_143, %c0_144] : memref<1x16x128xf32, #tpu.memory_space<vmem>>, vector<1x16x128xf32>
    %153 = vector.shape_cast %152 : vector<1x16x128xf32> to vector<16x128xf32>
    %154 = vector.shape_cast %151 : vector<16x128xf32> to vector<1x16x128xf32>
    tpu.vector_store %arg6[%c0_142, %c0_143, %c0_144], %154 {strides = array<i32>} : memref<1x16x128xf32, #tpu.memory_space<vmem>>, vector<1x16x128xf32>,
    return
  }
  func.func @transform_0(%arg0: i32) -> (i32, i32, i32) {
    %c0_i32 = arith.constant 0 : i32
    %c0_i32_0 = arith.constant 0 : i32
    %c0_i32_1 = arith.constant 0 : i32
    return %arg0, %c0_i32, %c0_i32_0 : i32, i32, i32
  }
  func.func @transform_1(%arg0: i32) -> (i32, i32, i32) {
    %c0_i32 = arith.constant 0 : i32
    %c0_i32_0 = arith.constant 0 : i32
    %c0_i32_1 = arith.constant 0 : i32
    %c0_i32_2 = arith.constant 0 : i32
    return %c0_i32, %c0_i32_0, %c0_i32_1 : i32, i32, i32
  }
  func.func @transform_2(%arg0: i32) -> (i32, i32, i32) {
    %c0_i32 = arith.constant 0 : i32
    %c0_i32_0 = arith.constant 0 : i32
    %c0_i32_1 = arith.constant 0 : i32
    %c0_i32_2 = arith.constant 0 : i32
    return %c0_i32, %c0_i32_0, %c0_i32_1 : i32, i32, i32
  }
  func.func @transform_3(%arg0: i32) -> (i32, i32) {
    %c0_i32 = arith.constant 0 : i32
    %c0_i32_0 = arith.constant 0 : i32
    %c0_i32_1 = arith.constant 0 : i32
    return %c0_i32, %c0_i32_0 : i32, i32
  }
  func.func @transform_4(%arg0: i32) -> (i32, i32) {
    %c0_i32 = arith.constant 0 : i32
    %c0_i32_0 = arith.constant 0 : i32
    %c0_i32_1 = arith.constant 0 : i32
    return %c0_i32, %c0_i32_0 : i32, i32
  }
  func.func @transform_5(%arg0: i32) -> (i32, i32, i32) {
    %c0_i32 = arith.constant 0 : i32
    %c0_i32_0 = arith.constant 0 : i32
    %c0_i32_1 = arith.constant 0 : i32
    return %arg0, %c0_i32, %c0_i32_0 : i32, i32, i32
  }
}

</mosaic_0001>

<bundles_post_ra>
// kernel: impala_block_pallas.1
= control target key start
LH: loop header
LB: loop body
LE: loop exit
PB: predicated region body
PF: predicated region fallthrough
CT: control target
= control target key end

     0   :  { %10 = vsyncpa [#allocation6], 0  ;;  %s3105_s18 = smov 0   ;;  %s3521_s0 = inlined_call_operand.vmem [shape: f32[2,16,64], index: 0, kind: input, shape index: {}]   ;;  %s3522_s1 = inlined_call_operand.vmem [shape: bf16[3,72,128], index: 1, kind: input, shape index: {}]   ;;  %s3523_s2 = inlined_call_operand.hbm [shape: bf16[12,160,128], index: 2, kind: input, shape index: {}]   ;;  %s3524_s3 = inlined_call_operand.vmem [shape: f32[1,128], index: 3, kind: input, shape index: {}]   ;;  %s3525_s4 = inlined_call_operand.vmem [shape: f32[4,128], index: 4, kind: input, shape index: {}]   ;;  %s3526_s5 = inlined_call_operand.vmem [shape: f32[2,16,128], index: 5, kind: output, shape index: {}]  }
   0x1 LB: > { %s3111_s19 = sadd.s32 4294967295, %s3061_s18   ;;  %p2582_p0 = scmp.ge.s32.totalorder %s3061_s18, 1  ;;  %s3061_s18 = sphi %s3105_s18, %s16_s18  }
   0x2   : > { %p157_p1 = scmp.lt.s32.totalorder %s3061_s18, 3  ;;  %s3063_s20 = smov [#allocation5]  }
   0x3   : > { %s172_s21 = sshll.u32 %s3063_s20, 4  ;;  %p3527_p3 = scmp.eq.s32.totalorder %s3111_s19, 0  ;;  %s173_s21 = int_to_ptr.vmem [resolvable:$true] %s172_s21 }
   0x4   : > { %p3115_p2 = pnand %p2582_p0, %p157_p1  ;;  %s3023_s26 = scalar_lea.hbm %s3523_s2, 15360 }
   0x5   : > { %p3024_p6 = scmp.ne.s32.totalorder %s3523_s2, %s3023_s26  ;;  %p3030_p10 = scmp.lt.u32.totalorder %s3023_s26, %s3523_s2 }
   0x6   : > { %s3529_s22 = scalar_select %p3115_p2, 1, 0 }
   0x7   : > { %p2862_p4 = pneg %p3115_p2 }
   0x9   : > { %p3124_p5 = pnand %p3527_p3, %p2862_p4 }
   0xb   : > { %p3025_p7 = pneg %p3124_p5 }
   0xd   : > { %p3026_p8 = pnand %p3025_p7, %p3024_p6 }
   0xf   : > { %p3027_p9 = pneg %p3026_p8 }
  0x11   : > { %p3032_p11 = pnand %p3030_p10, %p3027_p9 }
  0x13   : > { %3035 = shalt.err (!%p3032_p11)
}
  0x14   : > { %s3036_s6 = scalar_lea.vmem %s173_s21, 15360  ;;  %p3044_p1 = scmp.lt.s32.totalorder %s173_s21, %s173_s21 }
  0x15   : > { %p3037_p12 = scmp.ne.s32.totalorder %s173_s21, %s3036_s6  ;;  %p3045_p4 = scmp.lt.s32.totalorder %s3036_s6, %s3036_s6 }
  0x17   : > { %p3039_p13 = pnand %p3037_p12, %p3025_p7  ;;  %p3046_p3 = por %p3045_p4, %p3044_p1 }
  0x19   : > { %p3040_p0 = pneg %p3039_p13 }
  0x1b   : > { %p3047_p2 = pnand %p3046_p3, %p3040_p0 }
  0x1d   : > { %3050 = shalt.err (!%p3047_p2)
}
  0x1e   : > { %s3064_s7 = smov 64   ;;  %s3065_s8 = smov 4  }
  0x1f   : > { %2865 = dma.hbm_to_vmem [thread:$0]  (!%p3124_p5), %s3523_s2, 15360, %s173_s21, [#allocation6], %s3064_s7, %s3064_s7, %s3065_s8  }
  0x20   : > { %p3531_p6 = scmp.ne.s32.totalorder %s3529_s22, 0 }
  0x21   : > { %p3532_p8 = scmp.eq.s32.totalorder (!%p3531_p6), %s3111_s19, 0 }
  0x22   : > { %202 = sbr.rel (%p3531_p6) target bundleno = 2378 (0x94a), region = 40 }
  0x29   : > { %3056 = dma.done.wait (%p3532_p8), [#allocation6], 15360   ;;  %p3533_p7 = pmov %p3532_p8 }
  0x2a   : > { %p230_p2 = scmp.lt.s32.totalorder %s3111_s19, 1  ;;  %vm244_vm0 = vcmask 31744   ;;  %v3066_v0 = vmov 0.0   ;;  %vm247_vm1 = vcmask 589344   ;;  %vm3067_vm2 = vmmov 0   ;;  %s3068_s15 = smov 4  }
  0x2b   : > { %3058 = vsyncadd (%p3533_p7), [#allocation6], 4294951936  ;;  %2786 = vmatprep.subr.bf16.mxu0 %v3066_v0  ;;  %675 = vst [vmem:[#allocation4] sm:$0x3] %v3066_v0  ;;  %2796 = vmatprep.mubr.msk.bf16.mxu0 %vm3067_vm2, %v3066_v0  ;;  %vm241_vm3 = vcmask 581632   ;;  %v2888_v2 = vld [vmem:[%s3522_s1] sm:$0xff]   ;;  %v536_v32 = vlaneseq }
  0x2c   : > { %678 = vst [vmem:[#allocation4 + $0x20] sm:$0xc] %v3066_v0  ;;  %245 = vst.msk [vmem:[#allocation2 + $0x1] sm:$0xff] %vm244_vm0, %v3066_v0  ;;  %s3535_s19 = smov (!%p230_p2, %s3111_s19), 1  ;;  %2787 = vmatpush3.bf16.msra.mxu0 %v2888_v2  ;;  %v2889_v4 = vld [vmem:[%s3522_s1 + $0x8] sm:$0xff]   ;;  %v2890_v5 = vld [vmem:[%s3522_s1 + $0x10] sm:$0xff]  }
  0x2d   : > { %246 = vst.msk [vmem:[#allocation2 + $0x9] sm:$0xff] %vm244_vm0, %v3066_v0  ;;  %s2766_s11 = sshll.u32 %s3535_s19, 4  ;;  %2788 = vmatprep.subr.bf16.mxu0 %v3066_v0  ;;  %vm313_vm4 = vcmask 1043456   ;;  %v2891_v6 = vld [vmem:[%s3522_s1 + $0x18] sm:$0xff]   ;;  %v2892_v7 = vld [vmem:[%s3522_s1 + $0x20] ss:$0 sps:$4 sm:$0xff]  }
  0x2e   : > { %248 = vst.msk [vmem:[#allocation2 + $0x1] sm:$0xff] %vm247_vm1, %v3066_v0  ;;  %249 = vst.msk [vmem:[#allocation2 + $0x9] sm:$0xff] %vm247_vm1, %v3066_v0  ;;  %s234_s14 = scalar_lea.vmem %s3521_s0, %s2766_s11  ;;  %v315_v8 = vsel %vm313_vm4, %v2892_v7, 0  ;;  %vm260_vm5 = vcmask 556064   ;;  %vm309_vm6 = vcmask 588800   ;;  %v2893_v13 = vld [vmem:[%s3522_s1 + $0x24] sm:$0xff]   ;;  %s239_s20 = scalar_lea.vmem %s3526_s5, %s2766_s11 }
  0x2f   : > { %242 = vst.msk [vmem:[#allocation2] sm:$0x1] %vm241_vm3, %v3066_v0  ;;  %243 = vst.msk [vmem:[#allocation2 + $0x11] sm:$0x1] %vm241_vm3, %v3066_v0  ;;  %v250_v1 = vld [vmem:[%s234_s14] sm:$0xff]  ;;  %v251_v3 = vld [vmem:[%s234_s14 + $0x8] sm:$0xff] }
  0x30   : > { %254 = vrot.lane.b32.xlu0 %v250_v1, %s3068_s15  ;;  %2789 = vmatpush3.bf16.msra.mxu0 %v2889_v4  ;;  %v2894_v15 = vld [vmem:[%s3522_s1 + $0x2c] sm:$0xff]   ;;  %v2895_v16 = vld [vmem:[%s3522_s1 + $0x34] sm:$0xff]   ;;  %v2896_v17 = vld [vmem:[%s3522_s1 + $0x3c] sm:$0xff]   ;;  %vm545_vm7 = vcmask 64513   ;;  %vm551_vm8 = vcmask 130113   ;;  %vm538_vm9 = vcmp.lt.s32.totalorder %v536_v32, 144 }
  0x31   : > { %2790 = vmatprep.subr.bf16.mxu0 %v3066_v0  ;;  %v2897_v18 = vld [vmem:[%s3522_s1 + $0x44] ss:$0 sps:$4 sm:$0xff]   ;;  %v2898_v22 = vld [vmem:[%s3522_s1 + $0x48] sm:$0xff]   ;;  %v2899_v24 = vld [vmem:[%s3522_s1 + $0x50] sm:$0xff]   ;;  %v3069_v33 = vmov -3e+38  }
  0x32   : > { %v402_v19 = vsel %vm313_vm4, %v2897_v18, 0  ;;  %v2900_v25 = vld [vmem:[%s3522_s1 + $0x58] sm:$0xff]   ;;  %v2901_v26 = vld [vmem:[%s3522_s1 + $0x60] sm:$0xff]   ;;  %v2902_v27 = vld [vmem:[%s3522_s1 + $0x68] ss:$0 sps:$4 sm:$0xff]   ;;  %vm549_vm10 = vcmask 57344  }
  0x33   : > { %v491_v28 = vsel %vm313_vm4, %v2902_v27, 0  ;;  %546 = vst.msk [vmem:[#allocation3] sm:$0xfe] %vm545_vm7, %v3069_v33  ;;  %vm555_vm11 = vcmask 122944   ;;  %vm547_vm12 = vcmask 64512   ;;  %vm553_vm13 = vcmask 130112  }
  0x34   : > { %256 = vrot.lane.b32.xlu0 %v251_v3, %s3068_s15  ;;  %2791 = vmatpush3.bf16.msra.mxu0 %v2890_v5  ;;  %552 = vst.msk [vmem:[#allocation3 + $0x8] sm:$0xfe] %vm551_vm8, %v3069_v33  ;;  %v2591_v34 = vld [vmem:[%s3524_s3] ss:$0 sm:$0xff]  ;;  %vm559_vm14 = vcmask 1040384   ;;  %s3070_s28 = smov 8  }
  0x35   : > { %2792 = vmatprep.subr.bf16.mxu0 %v3066_v0  ;;  %543 = vst.msk [vmem:[#allocation3 + $0x21] ss:$8 sm:$0x3] %vm538_vm9, %v3069_v33  ;;  %540 = vst.msk [vmem:[#allocation3] ss:$8 sm:$0x3] %vm538_vm9, %v3069_v33 }
  0x36   : > { %550 = vst.msk [vmem:[#allocation3 + $0x20] sm:$0x1] %vm549_vm10, %v3069_v33  ;;  %vm572_vm15 = vcmask 1047617   ;;  %vm578_vm0 = vcmask 1040448   ;;  %vm575_vm1 = vcmask 1047616   ;;  %vm622_vm3 = vcmask 1045504  }
  0x37   : > { %556 = vst.msk [vmem:[#allocation3 + $0x28] sm:$0x1] %vm555_vm11, %v3069_v33  ;;  %s3071_s29 = smov 120   ;;  %vm681_vm4 = vcmask 130050   ;;  %s3072_s30 = smov 112   ;;  %v2905_v27 = vld [vmem:[#allocation5 + $0x10] sm:$0xff]  }
  0x38   : > { %2793 = vmatpush3.bf16.msra.mxu0 %v2891_v6  ;;  %548 = vst.msk [vmem:[#allocation3 + $0x10] sm:$0xff] %vm547_vm12, %v3069_v33  ;;  %vm691_vm8 = vcmask 255104   ;;  %vm676_vm9 = vcmask 254976   ;;  %vm683_vm11 = vcmask 130048   ;;  %s3074_s6 = smov 16  }
  0x39   : > { %2794 = vmatprep.subr.bf16.mxu0 %v3066_v0  ;;  %554 = vst.msk [vmem:[#allocation3 + $0x18] sm:$0xff] %vm553_vm13, %v3069_v33  ;;  %v2909_v33 = vld [vmem:[#allocation5 + $0x30] sm:$0xff]   ;;  %vm679_vm13 = vcmask 257026  }
  0x3a   : > { %682 = vst.msk [vmem:[#allocation4] sm:$0xfc] %vm681_vm4, %v3066_v0 }
  0x3b   : > { %692 = vst.msk [vmem:[#allocation4 + $0x28] sm:$0x3] %vm691_vm8, %v3066_v0 }
  0x3c   : > { %2795 = vmatpush3.bf16.msra.mxu0 %v315_v8  ;;  %677 = vst.msk [vmem:[#allocation4 + $0x8] sm:$0x3] %vm676_vm9, %v3066_v0 }
  0x3d   : > { %2800 = vmatprep.subr.bf16.mxu0 %v3066_v0  ;;  %684 = vst.msk [vmem:[#allocation4 + $0x10] sm:$0xff] %vm683_vm11, %v3066_v0 }
  0x3e   : > { %680 = vst.msk [vmem:[#allocation4 + $0x28] sm:$0xc] %vm679_vm13, %v3066_v0 }
  0xa2   : > { %v255_v9 = vpop.permute.xlu0 %254 }
  0xa3   : > { %261 = vst.msk [vmem:[#allocation2 + $0x1] sm:$0xff] %vm260_vm5, %v255_v9 }
  0xa6   : > { %v257_v10 = vpop.permute.xlu0 %256 }
  0xa7   : > { %262 = vst.msk [vmem:[#allocation2 + $0x9] sm:$0xff] %vm260_vm5, %v257_v10  ;;  %vm687_vm5 = vcmask 261250  }
  0xa8   : > { %688 = vst.msk [vmem:[#allocation4 + $0x8] sm:$0xfc] %vm687_vm5, %v3066_v0  ;;  %vm810_vm5 = vcmask 261120  }
  0xaa   : > { %v264_v11 = vld [vmem:[#allocation2] sm:$0xff] }
  0xab   : > { %v358_v21 = vld [vmem:[#allocation2 + $0x1] sm:$0xff] }
  0xae   : > { %v265_v12 = vld [vmem:[#allocation2 + $0x8] sm:$0xff] }
  0xaf   : > { %v266_v14 = vpack.c.bf16 %v265_v12, %v264_v11  ;;  %v359_v20 = vld [vmem:[#allocation2 + $0x9] sm:$0xff] }
  0xb0   : > { %v360_v23 = vpack.c.bf16 %v359_v20, %v358_v21  ;;  %v447_v29 = vld [vmem:[#allocation2 + $0x2] sm:$0xff]  ;;  %v448_v30 = vld [vmem:[#allocation2 + $0xa] sm:$0xff] }
  0xb1   : > { %2797 = vmatmul.mubr.msk.bf16.vlgmr.msra.gmra.mrb[0].mxu0 %vm309_vm6, %v266_v14  ;;  %v449_v31 = vpack.c.bf16 %v448_v30, %v447_v29  ;;  %v2907_v29 = vld [vmem:[#allocation5 + $0x20] sm:$0xff]   ;;  %v2908_v30 = vld [vmem:[#allocation5 + $0x28] sm:$0xff]  }
  0xb2   : > { %2801 = vmatpush3.bf16.msra.mxu0 %v2893_v13  ;;  %2810 = vmatprep.mubr.msk.bf16.mxu0 %vm3067_vm2, %v3066_v0 }
  0xb3   : > { %2802 = vmatprep.subr.bf16.mxu0 %v3066_v0 }
  0xb6   : > { %2803 = vmatpush3.bf16.msra.mxu0 %v2894_v15 }
  0xb7   : > { %2804 = vmatprep.subr.bf16.mxu0 %v3066_v0 }
  0xba   : > { %2805 = vmatpush3.bf16.msra.mxu0 %v2895_v16 }
  0xbb   : > { %2806 = vmatprep.subr.bf16.mxu0 %v3066_v0 }
  0xbe   : > { %2807 = vmatpush3.bf16.msra.mxu0 %v2896_v17 }
  0xbf   : > { %2808 = vmatprep.subr.bf16.mxu0 %v3066_v0 }
  0xc2   : > { %2809 = vmatpush3.bf16.msra.mxu0 %v402_v19 }
  0xc3   : > { %2814 = vmatprep.subr.bf16.mxu0 %v3066_v0 }
  0xc5   : > { %2811 = vmatmul.mubr.msk.bf16.vlgmr.msra.gmra.mrb[0].mxu0 %vm309_vm6, %v360_v23 }
  0xc6   : > { %2815 = vmatpush3.bf16.msra.mxu0 %v2898_v22  ;;  %2824 = vmatprep.mubr.msk.bf16.mxu0 %vm3067_vm2, %v3066_v0  ;;  %vm595_vm2 = vcmask 1046528  }
  0xc7   : > { %2816 = vmatprep.subr.bf16.mxu0 %v3066_v0 }
  0xca   : > { %2817 = vmatpush3.bf16.msra.mxu0 %v2899_v24  ;;  %v2903_v24 = vld [vmem:[#allocation5] sm:$0xff]  }
  0xcb   : > { %2818 = vmatprep.subr.bf16.mxu0 %v3066_v0 }
  0xce   : > { %2819 = vmatpush3.bf16.msra.mxu0 %v2900_v25  ;;  %v3073_v25 = vmov 0  }
  0xcf   : > { %2820 = vmatprep.subr.bf16.mxu0 %v3066_v0  ;;  %814 = vmatprep.subr.bf16.mxu1 %v3073_v25 }
  0xd0   : > { %815 = vmatpush1.bf16.msra.mxu1 %v2903_v24 }
  0xd1   : > { %816 = vmatprep.subr.bf16.mxu1 %v3073_v25 }
  0xd2   : > { %2821 = vmatpush3.bf16.msra.mxu0 %v2901_v26  ;;  %v2904_v26 = vld [vmem:[#allocation5 + $0x8] sm:$0xff]  }
  0xd3   : > { %2822 = vmatprep.subr.bf16.mxu0 %v3066_v0 }
  0xd4   : > { %817 = vmatpush1.bf16.msra.mxu1 %v2904_v26  ;;  %v2922_v26 = vld [vmem:[#allocation5 + $0x98] sm:$0xff]  }
  0xd5   : > { %818 = vmatprep.subr.bf16.mxu1 %v3073_v25 }
  0xd6   : > { %2823 = vmatpush3.bf16.msra.mxu0 %v491_v28  ;;  %v2906_v28 = vld [vmem:[#allocation5 + $0x18] sm:$0xff]  }
  0xd7   : > { %1268 = vmatprep.subr.bf16.mxu0 %v3073_v25 }
  0xd8   : > { %819 = vmatpush1.bf16.msra.mxu1 %v2905_v27 }
  0xd9   : > { %2825 = vmatmul.mubr.msk.bf16.vlgmr.msra.gmra.mrb[0].mxu0 %vm309_vm6, %v449_v31  ;;  %820 = vmatprep.subr.bf16.mxu1 %v3073_v25  ;;  %vm653_vm6 = vcmask 982016  }
  0xdc   : > { %821 = vmatpush1.bf16.msra.mxu1 %v2906_v28 }
  0xdd   : > { %822 = vmatprep.subr.bf16.mxu1 %v3073_v25 }
  0xe0   : > { %823 = vmatpush1.bf16.msra.mxu1 %v2907_v29 }
  0xe1   : > { %824 = vmatprep.subr.bf16.mxu1 %v3073_v25 }
  0xe4   : > { %825 = vmatpush1.bf16.msra.mxu1 %v2908_v30 }
  0xe5   : > { %826 = vmatprep.subr.bf16.mxu1 %v3073_v25 }
  0xe8   : > { %827 = vmatpush1.bf16.msra.mxu1 %v2909_v33 }
  0xe9   : > { %828 = vmatprep.subr.bf16.mxu1 %v3073_v25 }
 0x1ac   : > { %v527_v35 = vpop.f32.mrb[0].mxu0 }
 0x1ad   : > { %v2828_v36 = vadd.f32 %v2591_v34, %v527_v35  ;;  %v2826_v37 = vpop.f32.mrb[1].mxu0 }
 0x1ae   : > { %v530_v38 = vpop.f32.mrb[2].mxu0  ;;  %v2910_v37 = vld [vmem:[#allocation5 + $0x38] sm:$0xff]  }
 0x1af   : > { %v560_v39 = vrot.slane %v2828_v36, 7  ;;  %v2829_v40 = vadd.f32 %v2591_v34, %v530_v38  ;;  %v2827_v41 = vpop.f32.mrb[3].mxu0  ;;  %829 = vmatpush1.bf16.msra.mxu1 %v2910_v37  ;;  %v2927_v37 = vld [vmem:[#allocation5 + $0xc0] sm:$0xff]  }
 0x1b0   : > { %830 = vmatprep.subr.bf16.mxu1 %v3073_v25 }
 0x1b1   : > { %v561_v42 = vrot.slane %v2829_v40, 7  ;;  %563 = vrot.lane.b32.xlu1 %v560_v39, %s3070_s28 }
 0x1b3   : > { %567 = vrot.lane.b32.xlu0 %v561_v42, %s3070_s28  ;;  %v562_v43 = vsel %vm559_vm14, %v560_v39, %v561_v42  ;;  %vm697_vm14 = vcmask 1041408  }
 0x1b5   : > { %565 = vrot.lane.b32.xlu1 %v562_v43, %s3070_s28  ;;  %v2911_v43 = vld [vmem:[#allocation5 + $0x40] sm:$0xff]  }
 0x1b6   : > { %831 = vmatpush1.bf16.msra.mxu1 %v2911_v43 }
 0x1b7   : > { %832 = vmatprep.subr.bf16.mxu1 %v3073_v25 }
 0x223   : > { %v564_v44 = vpop.permute.xlu1 %563 }
 0x224   : > { %573 = vst.msk [vmem:[#allocation3] sm:$0xfe] %vm572_vm15, %v564_v44  ;;  %vm710_vm15 = vcmask 1047682  }
 0x225   : > { %574 = vst.msk [vmem:[#allocation3 + $0x8] sm:$0xfe] %vm545_vm7, %v564_v44  ;;  %v568_v45 = vpop.permute.xlu0 %567  ;;  %vm685_vm7 = vcmask 123904  }
 0x226   : > { %579 = vst.msk [vmem:[#allocation3 + $0x20] sm:$0x1] %vm578_vm0, %v568_v45  ;;  %vm716_vm0 = vcmask 1041536  }
 0x227   : > { %580 = vst.msk [vmem:[#allocation3 + $0x28] sm:$0x1] %vm549_vm10, %v568_v45  ;;  %v566_v46 = vpop.permute.xlu1 %565  ;;  %vm668_vm10 = vcmask 916480  }
 0x228   : > { %576 = vst.msk [vmem:[#allocation3 + $0x10] sm:$0xff] %vm575_vm1, %v566_v46  ;;  %vm713_vm1 = vcmask 1047680  }
 0x229   : > { %577 = vst.msk [vmem:[#allocation3 + $0x18] sm:$0xff] %vm547_vm12, %v566_v46  ;;  %vm689_vm12 = vcmask 261248  }
 0x22a   : > { %686 = vst.msk [vmem:[#allocation4 + $0x20] sm:$0x3] %vm685_vm7, %v3066_v0 }
 0x22b   : > { %v585_v48 = vld [vmem:[#allocation3] sm:$0xfe]  ;;  %690 = vst.msk [vmem:[#allocation4 + $0x18] sm:$0xff] %vm689_vm12, %v3066_v0 }
 0x22c   : > { %v586_v47 = vld [vmem:[#allocation3 + $0x8] sm:$0xfe]  ;;  %v614_v50 = vld [vmem:[#allocation3] sm:$0xfc]  ;;  %v596_v55 = vrot.slane %v585_v48, 1 }
 0x22d   : > { %v615_v49 = vld [vmem:[#allocation3 + $0x8] sm:$0xfc]  ;;  %v599_v53 = vrot.slane %v586_v47, 1  ;;  %v587_v56 = vld [vmem:[#allocation3 + $0x20] sm:$0x1]  ;;  %v623_v4 = vrot.slane %v614_v50, 2 }
 0x22e   : > { %v588_v51 = vld [vmem:[#allocation3 + $0x28] sm:$0x1]  ;;  %v626_v61 = vrot.slane %v615_v49, 2  ;;  %v581_v2 = vld [vmem:[#allocation3] sm:$0xff]  ;;  %v602_v5 = vrot.slane %v587_v56, 1 }
 0x22f   : > { %v583_v54 = vld [vmem:[#allocation3 + $0x10] sm:$0xff]  ;;  %v604_v62 = vrot.slane %v588_v51, 1  ;;  %v582_v63 = vld [vmem:[#allocation3 + $0x8] sm:$0xff]  ;;  %v616_v10 = vld [vmem:[#allocation3 + $0x20] sm:$0x3] }
 0x230   : > { %v584_v52 = vld [vmem:[#allocation3 + $0x18] sm:$0xff]  ;;  %v597_v59 = vrot.slane %v583_v54, 1  ;;  %v624_v60 = vrot.slane %v583_v54, 2  ;;  %v617_v9 = vld [vmem:[#allocation3 + $0x28] sm:$0x3]  ;;  %v629_v19 = vrot.slane %v616_v10, 2 }
 0x231   : > { %v600_v57 = vrot.slane %v584_v52, 1  ;;  %v627_v58 = vrot.slane %v584_v52, 2  ;;  %v631_v18 = vrot.slane %v617_v9, 2  ;;  %v2912_v50 = vld [vmem:[#allocation5 + $0x48] sm:$0xff]   ;;  %v2914_v9 = vld [vmem:[#allocation5 + $0x58] sm:$0xff]   ;;  %v2915_v10 = vld [vmem:[#allocation5 + $0x60] sm:$0xff]  }
 0x232   : > { %v598_v3 = vsel %vm595_vm2, %v596_v55, %v597_v59  ;;  %v625_v12 = vsel %vm622_vm3, %v623_v4, %v624_v60  ;;  %v603_v13 = vsel %vm595_vm2, %v597_v59, %v602_v5  ;;  %v630_v21 = vsel %vm622_vm3, %v624_v60, %v629_v19  ;;  %833 = vmatpush1.bf16.msra.mxu1 %v2912_v50  ;;  %v2913_v4 = vld [vmem:[#allocation5 + $0x50] sm:$0xff]  }
 0x233   : > { %v601_v1 = vsel %vm595_vm2, %v599_v53, %v600_v57  ;;  %v610_v7 = vmax.f32 %v581_v2, %v598_v3  ;;  %v605_v8 = vsel %vm595_vm2, %v600_v57, %v604_v62  ;;  %v628_v11 = vsel %vm622_vm3, %v626_v61, %v627_v58  ;;  %961 = vmatprep.subr.bf16.mxu1 %v3073_v25 }
 0x234   : > { %v611_v6 = vmax.f32 %v582_v63, %v601_v1  ;;  %v613_v16 = vmax.f32 %v584_v52, %v605_v8  ;;  %v612_v17 = vmax.f32 %v583_v54, %v603_v13  ;;  %v632_v20 = vsel %vm622_vm3, %v627_v58, %v631_v18  ;;  %v2918_v13 = vld [vmem:[#allocation5 + $0x78] sm:$0xff]  }
 0x235   : > { %v3255_v15 = vmax.f32 %v610_v7, %v625_v12  ;;  %v2917_v12 = vld [vmem:[#allocation5 + $0x70] sm:$0xff]  }
 0x236   : > { %v638_v14 = vmax.f32 %v611_v6, %v628_v11  ;;  %v640_v22 = vmax.f32 %v613_v16, %v632_v20  ;;  %v3260_v23 = vmax.f32 %v612_v17, %v630_v21  ;;  %v2916_v11 = vld [vmem:[#allocation5 + $0x68] sm:$0xff]   ;;  %v2921_v17 = vld [vmem:[#allocation5 + $0x90] sm:$0xff]  }
 0x237   : > { %645 = vrot.lane.b32.xlu1 %v3255_v15, %s3071_s29 }
 0x238   : > { %647 = vrot.lane.b32.xlu0 %v638_v14, %s3071_s29 }
 0x23b   : > { %649 = vrot.lane.b32.xlu1 %v3260_v23, %s3071_s29 }
 0x23c   : > { %651 = vrot.lane.b32.xlu0 %v640_v22, %s3071_s29 }
 0x23f   : > { %660 = vrot.lane.b32.xlu1 %v3255_v15, %s3072_s30 }
 0x240   : > { %662 = vrot.lane.b32.xlu0 %v638_v14, %s3072_s30  ;;  %v2919_v14 = vld [vmem:[#allocation5 + $0x80] sm:$0xff]  }
 0x243   : > { %664 = vrot.lane.b32.xlu1 %v3260_v23, %s3072_s30 }
 0x244   : > { %666 = vrot.lane.b32.xlu0 %v640_v22, %s3072_s30 }
 0x2a9   : > { %v646_v32 = vpop.permute.xlu1 %645 }
 0x2aa   : > { %v648_v31 = vpop.permute.xlu0 %647 }
 0x2ab   : > { %v654_v36 = vsel %vm653_vm6, %v646_v32, %v648_v31  ;;  %v2923_v31 = vld [vmem:[#allocation5 + $0xa0] sm:$0xff]  }
 0x2ac   : > { %v658_v38 = vmax.f32 %v3255_v15, %v654_v36  ;;  %v2920_v15 = vld [vmem:[#allocation5 + $0x88] sm:$0xff]   ;;  %v2926_v36 = vld [vmem:[#allocation5 + $0xb8] sm:$0xff]  }
 0x2ad   : > { %v650_v35 = vpop.permute.xlu1 %649 }
 0x2ae   : > { %v652_v34 = vpop.permute.xlu0 %651 }
 0x2af   : > { %v655_v41 = vsel %vm653_vm6, %v650_v35, %v652_v34  ;;  %v2924_v34 = vld [vmem:[#allocation5 + $0xa8] sm:$0xff]   ;;  %v2925_v35 = vld [vmem:[#allocation5 + $0xb0] sm:$0xff]  }
 0x2b0   : > { %v659_v45 = vmax.f32 %v3260_v23, %v655_v41 }
 0x2b1   : > { %v661_v40 = vpop.permute.xlu1 %660 }
 0x2b2   : > { %v663_v39 = vpop.permute.xlu0 %662 }
 0x2b3   : > { %v669_v42 = vsel %vm668_vm10, %v661_v40, %v663_v39  ;;  %v2929_v39 = vld [vmem:[#allocation5 + $0xd0] sm:$0xff]   ;;  %v2930_v40 = vld [vmem:[#allocation5 + $0xd8] sm:$0xff]  }
 0x2b4   : > { %v3288_v44 = vmax.f32 %v658_v38, %v669_v42  ;;  %v2928_v38 = vld [vmem:[#allocation5 + $0xc8] sm:$0xff]   ;;  %v2931_v42 = vld [vmem:[#allocation5 + $0xe0] sm:$0xff]  }
 0x2b5   : > { %v665_v47 = vpop.permute.xlu1 %664 }
 0x2b6   : > { %v667_v46 = vpop.permute.xlu0 %666  ;;  %v693_v48 = vmax.f32 %v3288_v44, 0.0 }
 0x2b7   : > { %v670_v49 = vsel %vm668_vm10, %v665_v47, %v667_v46  ;;  %v2932_v47 = vld [vmem:[#allocation5 + $0xe8] sm:$0xff]  }
 0x2b8   : > { %v3295_v51 = vmax.f32 %v659_v45, %v670_v49  ;;  %v698_v52 = vrot.slane %v693_v48, 6 }
 0x2ba   : > { %701 = vrot.lane.b32.xlu1 %v698_v52, %s3074_s6  ;;  %v694_v0 = vmax.f32 %v3295_v51, 0.0 }
 0x2bc   : > { %v699_v53 = vrot.slane %v694_v0, 6  ;;  %v2935_v0 = vld [vmem:[#allocation5 + $0x190] sm:$0xff]  }
 0x2be   : > { %705 = vrot.lane.b32.xlu1 %v699_v53, %s3074_s6  ;;  %v700_v54 = vsel %vm697_vm14, %v698_v52, %v699_v53  ;;  %v2933_v52 = vld [vmem:[#allocation5 + $0xf0] sm:$0xff]   ;;  %v2934_v53 = vld [vmem:[#allocation5 + $0xf8] sm:$0xff]  }
 0x2bf   : > { %703 = vrot.lane.b32.xlu0 %v700_v54, %s3074_s6  ;;  %1269 = vmatpush1.bf16.msra.mxu0 %v2933_v52  ;;  %v2937_v54 = vld [vmem:[#allocation5 + $0x198] sm:$0xff]  }
 0x2c0   : > { %1270 = vmatprep.subr.bf16.mxu0 %v3073_v25 }
 0x2c3   : > { %1271 = vmatpush1.bf16.msra.mxu0 %v2934_v53 }
 0x2c4   : > { %1272 = vmatprep.subr.bf16.mxu0 %v3073_v25 }
 0x32c   : > { %v702_v55 = vpop.permute.xlu1 %701 }
 0x32d   : > { %711 = vst.msk [vmem:[#allocation4] sm:$0xfc] %vm710_vm15, %v702_v55 }
 0x32e   : > { %712 = vst.msk [vmem:[#allocation4 + $0x8] sm:$0xfc] %vm681_vm4, %v702_v55  ;;  %v2936_v55 = vld [vmem:[#allocation5 + $0x100] sm:$0xff]  }
 0x32f   : > { %1273 = vmatpush1.bf16.msra.mxu0 %v2936_v55  ;;  %v2956_v55 = vld [vmem:[#allocation5 + $0x158] sm:$0xff]  }
 0x330   : > { %v706_v56 = vpop.permute.xlu1 %705  ;;  %1274 = vmatprep.subr.bf16.mxu0 %v3073_v25 }
 0x331   : > { %717 = vst.msk [vmem:[#allocation4 + $0x20] sm:$0x3] %vm716_vm0, %v706_v56  ;;  %v704_v57 = vpop.permute.xlu0 %703 }
 0x332   : > { %718 = vst.msk [vmem:[#allocation4 + $0x28] sm:$0x3] %vm685_vm7, %v706_v56  ;;  %v2939_v56 = vld [vmem:[#allocation5 + $0x1a0] sm:$0xff]  }
 0x333   : > { %714 = vst.msk [vmem:[#allocation4 + $0x10] sm:$0xff] %vm713_vm1, %v704_v57 }
 0x334   : > { %715 = vst.msk [vmem:[#allocation4 + $0x18] sm:$0xff] %vm683_vm11, %v704_v57  ;;  %v720_v59 = vld [vmem:[#allocation4] sm:$0xff]  ;;  %v2938_v57 = vld [vmem:[#allocation5 + $0x108] sm:$0xff]  }
 0x335   : > { %v721_v58 = vld [vmem:[#allocation4 + $0x8] sm:$0xff]  ;;  %v855_v19 = vld [vmem:[#allocation4] sm:$0xfc]  ;;  %1275 = vmatpush1.bf16.msra.mxu0 %v2938_v57  ;;  %v2958_v57 = vld [vmem:[#allocation5 + $0x168] sm:$0xff]  }
 0x336   : > { %v856_v63 = vld [vmem:[#allocation4 + $0x8] sm:$0xfc]  ;;  %v1004_v43 = vld [vmem:[#allocation4] sm:$0xf0]  ;;  %1276 = vmatprep.subr.bf16.mxu0 %v3073_v25 }
 0x337   : > { %v1005_v22 = vld [vmem:[#allocation4 + $0x8] sm:$0xf0] }
 0x338   : > { %v859_v16 = vld [vmem:[#allocation4 + $0x20] sm:$0x3] }
 0x339   : > { %v860_v60 = vld [vmem:[#allocation4 + $0x28] sm:$0x3]  ;;  %v863_v21 = vpack.c.bf16 %v859_v16, %v859_v16  ;;  %v1006_v41 = vld [vmem:[#allocation4 + $0x20] sm:$0xf] }
 0x33a   : > { %v3310_v62 = vld [vmem:[#allocation4 + $0x10] sm:$0xff]  ;;  %v864_v1 = vpack.c.bf16 %v860_v60, %v860_v60  ;;  %v1007_v18 = vld [vmem:[#allocation4 + $0x28] sm:$0xf]  ;;  %v1010_v46 = vpack.c.bf16 %v1006_v41, %v1006_v41  ;;  %v2943_v60 = vld [vmem:[#allocation5 + $0x1b0] sm:$0xff]  }
 0x33b   : > { %v723_v61 = vld [vmem:[#allocation4 + $0x18] sm:$0xff]  ;;  %v724_v3 = vpack.c.bf16 %v3310_v62, %v720_v59  ;;  %v861_v20 = vpack.c.bf16 %v3310_v62, %v855_v19  ;;  %v1011_v24 = vpack.c.bf16 %v1007_v18, %v1007_v18  ;;  %v892_v28 = vrot.slane %v863_v21, 1  ;;  %v2940_v59 = vld [vmem:[#allocation5 + $0x110] sm:$0xff]   ;;  %v2953_v19 = vld [vmem:[#allocation5 + $0x1d8] sm:$0xff]  }
 0x33c   : > { %v725_v2 = vpack.c.bf16 %v723_v61, %v721_v58  ;;  %v862_v5 = vpack.c.bf16 %v723_v61, %v856_v63  ;;  %v895_v6 = vrot.slane %v864_v1, 1  ;;  %v1009_v23 = vpack.c.bf16 %v723_v61, %v1005_v22  ;;  %v2941_v58 = vld [vmem:[#allocation5 + $0x1a8] sm:$0xff]   ;;  %1277 = vmatpush1.bf16.msra.mxu0 %v2940_v59  ;;  %v2942_v61 = vld [vmem:[#allocation5 + $0x118] sm:$0xff]   ;;  %v2944_v63 = vld [vmem:[#allocation5 + $0x120] sm:$0xff]  }
 0x33d   : > { %v891_v27 = vrot.slane %v861_v20, 1  ;;  %v1042_v30 = vrot.slane %v1011_v24, 2  ;;  %v1008_v45 = vpack.c.bf16 %v3310_v62, %v1004_v43  ;;  %v1039_v49 = vrot.slane %v1010_v46, 2  ;;  %v2945_v62 = vld [vmem:[#allocation5 + $0x1b8] sm:$0xff]   ;;  %1278 = vmatprep.subr.bf16.mxu0 %v3073_v25  ;;  %v2946_v1 = vld [vmem:[#allocation5 + $0x128] sm:$0xff]  }
 0x33e   : > { %2639 = vmatprep.mubr.msk.bf16.mxu1 %vm810_vm5, %v725_v2  ;;  %v894_v7 = vrot.slane %v862_v5, 1  ;;  %v1041_v29 = vrot.slane %v1009_v23, 2  ;;  %v2947_v2 = vld [vmem:[#allocation5 + $0x1c0] sm:$0xff]   ;;  %v2949_v5 = vld [vmem:[#allocation5 + $0x1c8] sm:$0xff]   ;;  %v2960_v59 = vld [vmem:[#allocation5 + $0x178] sm:$0xff]  }
 0x33f   : > { %847 = vmatmul.mubr.bf16.vlgmr.msra.gmra.mrb[0].mxu1 %v724_v3  ;;  %v893_v32 = vsel %vm595_vm2, %v891_v27, %v892_v28  ;;  %v1038_v48 = vrot.slane %v1008_v45, 2  ;;  %v2628_v3 = vld [vmem:[%s3525_s4] ss:$0 sm:$0xff] }
 0x340   : > { %962 = vmatpush1.bf16.msra.mxu1 %v2913_v4  ;;  %v896_v8 = vsel %vm595_vm2, %v894_v7, %v895_v6  ;;  %v1043_v33 = vsel %vm622_vm3, %v1041_v29, %v1042_v30  ;;  %1279 = vmatpush1.bf16.msra.mxu0 %v2942_v61  ;;  %v2948_v4 = vld [vmem:[#allocation5 + $0x130] sm:$0xff]   ;;  %v2950_v7 = vld [vmem:[#allocation5 + $0x138] sm:$0xff]   ;;  %v2961_v61 = vld [vmem:[#allocation5 + $0x180] sm:$0xff]  }
 0x341   : > { %2650 = vmatprep.mubr.msk.bf16.mxu1 %vm810_vm5, %v896_v8  ;;  %963 = vmatprep.subr.bf16.mxu1 %v3073_v25  ;;  %v1040_v50 = vsel %vm622_vm3, %v1038_v48, %v1039_v49 }
 0x342   : > { %1280 = vmatprep.subr.bf16.mxu0 %v3073_v25 }
 0x344   : > { %964 = vmatpush1.bf16.msra.mxu1 %v2914_v9  ;;  %1281 = vmatpush1.bf16.msra.mxu0 %v2944_v63 }
 0x345   : > { %965 = vmatprep.subr.bf16.mxu1 %v3073_v25  ;;  %1282 = vmatprep.subr.bf16.mxu0 %v3073_v25 }
 0x348   : > { %966 = vmatpush1.bf16.msra.mxu1 %v2915_v10  ;;  %1283 = vmatpush1.bf16.msra.mxu0 %v2946_v1 }
 0x349   : > { %967 = vmatprep.subr.bf16.mxu1 %v3073_v25  ;;  %1284 = vmatprep.subr.bf16.mxu0 %v3073_v25 }
 0x34c   : > { %968 = vmatpush1.bf16.msra.mxu1 %v2916_v11  ;;  %1285 = vmatpush1.bf16.msra.mxu0 %v2948_v4 }
 0x34d   : > { %969 = vmatprep.subr.bf16.mxu1 %v3073_v25  ;;  %1286 = vmatprep.subr.bf16.mxu0 %v3073_v25 }
 0x350   : > { %970 = vmatpush1.bf16.msra.mxu1 %v2917_v12  ;;  %1287 = vmatpush1.bf16.msra.mxu0 %v2950_v7  ;;  %v2964_v7 = vld [vmem:[#allocation5 + $0x1e8] sm:$0xff]  }
 0x351   : > { %971 = vmatprep.subr.bf16.mxu1 %v3073_v25  ;;  %1414 = vmatprep.subr.bf16.mxu0 %v3073_v25 }
 0x354   : > { %972 = vmatpush1.bf16.msra.mxu1 %v2918_v13 }
 0x355   : > { %973 = vmatprep.subr.bf16.mxu1 %v3073_v25 }
 0x358   : > { %974 = vmatpush1.bf16.msra.mxu1 %v2919_v14  ;;  %v2951_v14 = vld [vmem:[#allocation5 + $0x1d0] sm:$0xff]  }
 0x359   : > { %975 = vmatprep.subr.bf16.mxu1 %v3073_v25 }
 0x35c   : > { %976 = vmatpush1.bf16.msra.mxu1 %v2920_v15 }
 0x35d   : > { %977 = vmatprep.subr.bf16.mxu1 %v3073_v25 }
 0x360   : > { %978 = vmatpush1.bf16.msra.mxu1 %v2921_v17 }
 0x361   : > { %979 = vmatprep.subr.bf16.mxu1 %v3073_v25 }
 0x364   : > { %980 = vmatpush1.bf16.msra.mxu1 %v2922_v26  ;;  %v2952_v26 = vld [vmem:[#allocation5 + $0x140] sm:$0xff]  }
 0x365   : > { %1108 = vmatprep.subr.bf16.mxu1 %v3073_v25 }
 0x367   : > { %994 = vmatmul.mubr.bf16.vlgmr.msra.gmra.mrb[0].mxu1 %v893_v32 }
 0x368   : > { %1109 = vmatpush1.bf16.msra.mxu1 %v2923_v31  ;;  %2661 = vmatprep.mubr.msk.bf16.mxu1 %vm810_vm5, %v1043_v33 }
 0x369   : > { %1110 = vmatprep.subr.bf16.mxu1 %v3073_v25 }
 0x36c   : > { %1111 = vmatpush1.bf16.msra.mxu1 %v2924_v34 }
 0x36d   : > { %1112 = vmatprep.subr.bf16.mxu1 %v3073_v25 }
 0x370   : > { %1113 = vmatpush1.bf16.msra.mxu1 %v2925_v35 }
 0x371   : > { %1114 = vmatprep.subr.bf16.mxu1 %v3073_v25 }
 0x374   : > { %1115 = vmatpush1.bf16.msra.mxu1 %v2926_v36 }
 0x375   : > { %1116 = vmatprep.subr.bf16.mxu1 %v3073_v25 }
 0x378   : > { %1117 = vmatpush1.bf16.msra.mxu1 %v2927_v37 }
 0x379   : > { %1118 = vmatprep.subr.bf16.mxu1 %v3073_v25 }
 0x37c   : > { %1119 = vmatpush1.bf16.msra.mxu1 %v2928_v38 }
 0x37d   : > { %1120 = vmatprep.subr.bf16.mxu1 %v3073_v25 }
 0x380   : > { %1121 = vmatpush1.bf16.msra.mxu1 %v2929_v39 }
 0x381   : > { %1122 = vmatprep.subr.bf16.mxu1 %v3073_v25 }
 0x384   : > { %1123 = vmatpush1.bf16.msra.mxu1 %v2930_v40 }
 0x385   : > { %1124 = vmatprep.subr.bf16.mxu1 %v3073_v25 }
 0x388   : > { %1125 = vmatpush1.bf16.msra.mxu1 %v2931_v42 }
 0x389   : > { %1126 = vmatprep.subr.bf16.mxu1 %v3073_v25 }
 0x38c   : > { %1127 = vmatpush1.bf16.msra.mxu1 %v2932_v47 }
 0x38d   : > { %1560 = vmatprep.subr.bf16.mxu1 %v3073_v25 }
 0x38f   : > { %1141 = vmatmul.mubr.bf16.vlgmr.msra.gmra.mrb[0].mxu1 %v1040_v50  ;;  %v2954_v50 = vld [vmem:[#allocation5 + $0x148] sm:$0xff]  }
 0x390   : > { %1561 = vmatpush1.bf16.msra.mxu1 %v2935_v0 }
 0x391   : > { %1562 = vmatprep.subr.bf16.mxu1 %v3073_v25 }
 0x394   : > { %1563 = vmatpush1.bf16.msra.mxu1 %v2937_v54  ;;  %v2955_v54 = vld [vmem:[#allocation5 + $0x150] sm:$0xff]  }
 0x395   : > { %1564 = vmatprep.subr.bf16.mxu1 %v3073_v25 }
 0x398   : > { %1565 = vmatpush1.bf16.msra.mxu1 %v2939_v56  ;;  %v2957_v56 = vld [vmem:[#allocation5 + $0x160] sm:$0xff]  }
 0x399   : > { %1566 = vmatprep.subr.bf16.mxu1 %v3073_v25 }
 0x39c   : > { %1567 = vmatpush1.bf16.msra.mxu1 %v2941_v58  ;;  %v2959_v58 = vld [vmem:[#allocation5 + $0x170] sm:$0xff]  }
 0x39d   : > { %1568 = vmatprep.subr.bf16.mxu1 %v3073_v25 }
 0x3a0   : > { %1569 = vmatpush1.bf16.msra.mxu1 %v2943_v60 }
 0x3a1   : > { %1570 = vmatprep.subr.bf16.mxu1 %v3073_v25 }
 0x3a4   : > { %1571 = vmatpush1.bf16.msra.mxu1 %v2945_v62 }
 0x3a5   : > { %1572 = vmatprep.subr.bf16.mxu1 %v3073_v25 }
 0x3a8   : > { %1573 = vmatpush1.bf16.msra.mxu1 %v2947_v2  ;;  %v2962_v2 = vld [vmem:[#allocation5 + $0x188] sm:$0xff]  }
 0x3a9   : > { %1574 = vmatprep.subr.bf16.mxu1 %v3073_v25 }
 0x3ac   : > { %1575 = vmatpush1.bf16.msra.mxu1 %v2949_v5 }
 0x3ad   : > { %1576 = vmatprep.subr.bf16.mxu1 %v3073_v25 }
 0x3b0   : > { %1577 = vmatpush1.bf16.msra.mxu1 %v2951_v14 }
 0x3b1   : > { %1578 = vmatprep.subr.bf16.mxu1 %v3073_v25 }
 0x3b4   : > { %1579 = vmatpush1.bf16.msra.mxu1 %v2953_v19 }
 0x3b5   : > { %2174 = vmatprep.subr.bf16.mxu1 %v3073_v25 }
 0x462   : > { %v1142_v6 = vpop.f32.mrb[0].mxu1 }
 0x463   : > { %v2830_v8 = vadd.f32 %v2628_v3, %v1142_v6  ;;  %v1144_v9 = vpop.f32.mrb[1].mxu1  ;;  %v2963_v6 = vld [vmem:[#allocation5 + $0x1e0] sm:$0xff]  }
 0x464   : > { %v1145_v10 = vpop.f32.mrb[2].mxu1  ;;  %v2966_v9 = vld [vmem:[#allocation5 + $0x1f8] sm:$0xff]  }
 0x465   : > { %v1151_v11 = vmax.f32 %v2830_v8, 0.0  ;;  %v2831_v12 = vadd.f32 %v2628_v3, %v1145_v10  ;;  %v1147_v13 = vpop.f32.mrb[3].mxu1  ;;  %v2965_v8 = vld [vmem:[#allocation5 + $0x1f0] sm:$0xff]   ;;  %v2967_v10 = vld [vmem:[#allocation5 + $0x200] sm:$0xff]  }
 0x467   : > { %v1155_v15 = vrot.slane %v1151_v11, 6  ;;  %v1152_v16 = vmax.f32 %v2831_v12, 0.0  ;;  %v2968_v11 = vld [vmem:[#allocation5 + $0x208] sm:$0xff]   ;;  %v2969_v12 = vld [vmem:[#allocation5 + $0x210] sm:$0xff]  }
 0x469   : > { %v1156_v17 = vrot.slane %v1152_v16, 6  ;;  %1158 = vrot.lane.b32.xlu0 %v1155_v15, %s3074_s6 }
 0x46b   : > { %v1157_v18 = vsel %vm697_vm14, %v1155_v15, %v1156_v17 }
 0x46c   : > { %1160 = vrot.lane.b32.xlu1 %v1157_v18, %s3074_s6 }
 0x46d   : > { %1162 = vrot.lane.b32.xlu0 %v1156_v17, %s3074_s6 }
 0x4db   : > { %v1159_v20 = vpop.permute.xlu0 %1158 }
 0x4dc   : > { %1167 = vst.msk [vmem:[#allocation4] sm:$0xfc] %vm710_vm15, %v1159_v20 }
 0x4dd   : > { %1168 = vst.msk [vmem:[#allocation4 + $0x8] sm:$0xfc] %vm681_vm4, %v1159_v20 }
 0x4de   : > { %v1161_v21 = vpop.permute.xlu1 %1160 }
 0x4df   : > { %1169 = vst.msk [vmem:[#allocation4 + $0x10] sm:$0xff] %vm713_vm1, %v1161_v21  ;;  %v1163_v22 = vpop.permute.xlu0 %1162 }
 0x4e0   : > { %1170 = vst.msk [vmem:[#allocation4 + $0x18] sm:$0xff] %vm683_vm11, %v1161_v21  ;;  %v2662_v21 = vld [vmem:[%s3525_s4 + $0x1] ss:$0 sm:$0xff] }
 0x4e1   : > { %1171 = vst.msk [vmem:[#allocation4 + $0x20] sm:$0x3] %vm716_vm0, %v1163_v22 }
 0x4e2   : > { %1172 = vst.msk [vmem:[#allocation4 + $0x28] sm:$0x3] %vm685_vm7, %v1163_v22  ;;  %v2970_v22 = vld [vmem:[#allocation5 + $0x218] sm:$0xff]  }
 0x4e3   : > { %v1174_v24 = vld [vmem:[#allocation4] sm:$0xff] }
 0x4e4   : > { %v1175_v23 = vld [vmem:[#allocation4 + $0x8] sm:$0xff]  ;;  %v1457_v31 = vld [vmem:[#allocation4] sm:$0xf0] }
 0x4e5   : > { %v1310_v27 = vld [vmem:[#allocation4 + $0x8] sm:$0xfc]  ;;  %v1309_v62 = vld [vmem:[#allocation4] sm:$0xfc] }
 0x4e6   : > { %v1458_v28 = vld [vmem:[#allocation4 + $0x8] sm:$0xf0]  ;;  %v1176_v30 = vld [vmem:[#allocation4 + $0x10] sm:$0xff] }
 0x4e7   : > { %v1177_v29 = vld [vmem:[#allocation4 + $0x18] sm:$0xff]  ;;  %v1178_v33 = vpack.c.bf16 %v1176_v30, %v1174_v24  ;;  %v1461_v41 = vpack.c.bf16 %v1176_v30, %v1457_v31  ;;  %v1315_v63 = vpack.c.bf16 %v1176_v30, %v1309_v62  ;;  %v2971_v30 = vld [vmem:[#allocation5 + $0x220] sm:$0xff]   ;;  %v2977_v62 = vld [vmem:[#allocation5 + $0x250] sm:$0xff]  }
 0x4e8   : > { %v1179_v32 = vpack.c.bf16 %v1177_v29, %v1175_v23  ;;  %v1316_v35 = vpack.c.bf16 %v1177_v29, %v1310_v27  ;;  %v1462_v37 = vpack.c.bf16 %v1177_v29, %v1458_v28  ;;  %v1459_v38 = vld [vmem:[#allocation4 + $0x20] sm:$0xf] }
 0x4e9   : > { %v1314_v34 = vld [vmem:[#allocation4 + $0x28] sm:$0x3]  ;;  %v1463_v42 = vpack.c.bf16 %v1459_v38, %v1459_v38  ;;  %v1490_v48 = vrot.slane %v1461_v41, 2  ;;  %v1313_v60 = vld [vmem:[#allocation4 + $0x20] sm:$0x3]  ;;  %v1344_v3 = vrot.slane %v1315_v63, 1 }
 0x4ea   : > { %v1460_v36 = vld [vmem:[#allocation4 + $0x28] sm:$0xf]  ;;  %v1318_v39 = vpack.c.bf16 %v1314_v34, %v1314_v34  ;;  %2673 = vmatprep.mubr.msk.bf16.mxu0 %vm810_vm5, %v1179_v32  ;;  %v1347_v43 = vrot.slane %v1316_v35, 1  ;;  %v1493_v45 = vrot.slane %v1462_v37, 2  ;;  %v1317_v1 = vpack.c.bf16 %v1313_v60, %v1313_v60  ;;  %v2972_v34 = vld [vmem:[#allocation5 + $0x228] sm:$0xff]   ;;  %v2975_v60 = vld [vmem:[#allocation5 + $0x240] sm:$0xff]  }
 0x4eb   : > { %v1464_v40 = vpack.c.bf16 %v1460_v36, %v1460_v36  ;;  %1301 = vmatmul.mubr.bf16.vlgmr.msra.gmra.mrb[4].mxu0 %v1178_v33  ;;  %v1491_v49 = vrot.slane %v1463_v42, 2  ;;  %v2978_v63 = vld [vmem:[#allocation5 + $0x258] sm:$0xff]  }
 0x4ec   : > { %v1348_v46 = vrot.slane %v1318_v39, 1  ;;  %1415 = vmatpush1.bf16.msra.mxu0 %v2952_v26  ;;  %v1345_v4 = vrot.slane %v1317_v1, 1  ;;  %v2979_v1 = vld [vmem:[#allocation5 + $0x260] sm:$0xff]  }
 0x4ed   : > { %v1494_v47 = vrot.slane %v1464_v40, 2  ;;  %1416 = vmatprep.subr.bf16.mxu0 %v3073_v25  ;;  %v1492_v53 = vsel %vm622_vm3, %v1490_v48, %v1491_v49 }
 0x4ee   : > { %v1349_v52 = vsel %vm595_vm2, %v1347_v43, %v1348_v46  ;;  %v1346_v5 = vsel %vm595_vm2, %v1344_v3, %v1345_v4  ;;  %v2981_v4 = vld [vmem:[#allocation5 + $0x270] sm:$0xff]  }
 0x4ef   : > { %v1495_v0 = vsel %vm622_vm3, %v1493_v45, %v1494_v47  ;;  %2684 = vmatprep.mubr.msk.bf16.mxu0 %vm810_vm5, %v1349_v52 }
 0x4f0   : > { %2695 = vmatprep.mubr.msk.bf16.mxu1 %vm810_vm5, %v1495_v0  ;;  %1417 = vmatpush1.bf16.msra.mxu0 %v2954_v50  ;;  %v2973_v0 = vld [vmem:[#allocation5 + $0x230] sm:$0xff]  }
 0x4f1   : > { %1593 = vmatmul.mubr.bf16.vlgmr.msra.gmra.mrb[4].mxu1 %v1492_v53  ;;  %1418 = vmatprep.subr.bf16.mxu0 %v3073_v25 }
 0x4f4   : > { %1419 = vmatpush1.bf16.msra.mxu0 %v2955_v54 }
 0x4f5   : > { %1420 = vmatprep.subr.bf16.mxu0 %v3073_v25 }
 0x4f8   : > { %1421 = vmatpush1.bf16.msra.mxu0 %v2956_v55 }
 0x4f9   : > { %1422 = vmatprep.subr.bf16.mxu0 %v3073_v25 }
 0x4fc   : > { %1423 = vmatpush1.bf16.msra.mxu0 %v2957_v56 }
 0x4fd   : > { %1424 = vmatprep.subr.bf16.mxu0 %v3073_v25 }
 0x500   : > { %1425 = vmatpush1.bf16.msra.mxu0 %v2958_v57 }
 0x501   : > { %1426 = vmatprep.subr.bf16.mxu0 %v3073_v25 }
 0x504   : > { %1427 = vmatpush1.bf16.msra.mxu0 %v2959_v58  ;;  %v2974_v58 = vld [vmem:[#allocation5 + $0x238] sm:$0xff]  }
 0x505   : > { %1428 = vmatprep.subr.bf16.mxu0 %v3073_v25 }
 0x508   : > { %1429 = vmatpush1.bf16.msra.mxu0 %v2960_v59 }
 0x509   : > { %1430 = vmatprep.subr.bf16.mxu0 %v3073_v25 }
 0x50c   : > { %1431 = vmatpush1.bf16.msra.mxu0 %v2961_v61  ;;  %v2976_v61 = vld [vmem:[#allocation5 + $0x248] sm:$0xff]  }
 0x50d   : > { %1432 = vmatprep.subr.bf16.mxu0 %v3073_v25 }
 0x510   : > { %1433 = vmatpush1.bf16.msra.mxu0 %v2962_v2  ;;  %v2980_v2 = vld [vmem:[#allocation5 + $0x268] sm:$0xff]  }
 0x511   : > { %1722 = vmatprep.subr.bf16.mxu0 %v3073_v25 }
 0x513   : > { %1447 = vmatmul.mubr.bf16.vlgmr.msra.gmra.mrb[8].mxu0 %v1346_v5 }
 0x514   : > { %1723 = vmatpush1.bf16.msra.mxu0 %v2963_v6 }
 0x515   : > { %1724 = vmatprep.subr.bf16.mxu0 %v3073_v25 }
 0x518   : > { %1725 = vmatpush1.bf16.msra.mxu0 %v2964_v7 }
 0x519   : > { %1726 = vmatprep.subr.bf16.mxu0 %v3073_v25 }
 0x51c   : > { %1727 = vmatpush1.bf16.msra.mxu0 %v2965_v8 }
 0x51d   : > { %1728 = vmatprep.subr.bf16.mxu0 %v3073_v25 }
 0x520   : > { %1729 = vmatpush1.bf16.msra.mxu0 %v2966_v9 }
 0x521   : > { %1730 = vmatprep.subr.bf16.mxu0 %v3073_v25 }
 0x524   : > { %1731 = vmatpush1.bf16.msra.mxu0 %v2967_v10 }
 0x525   : > { %1732 = vmatprep.subr.bf16.mxu0 %v3073_v25 }
 0x528   : > { %1733 = vmatpush1.bf16.msra.mxu0 %v2968_v11 }
 0x529   : > { %1734 = vmatprep.subr.bf16.mxu0 %v3073_v25 }
 0x52c   : > { %1735 = vmatpush1.bf16.msra.mxu0 %v2969_v12  ;;  %v2982_v12 = vld [vmem:[#allocation5 + $0x278] sm:$0xff]  }
 0x52d   : > { %1736 = vmatprep.subr.bf16.mxu0 %v3073_v25 }
 0x530   : > { %1737 = vmatpush1.bf16.msra.mxu0 %v2970_v22  ;;  %v2986_v22 = vld [vmem:[#allocation5 + $0x298] sm:$0xff]  }
 0x531   : > { %1738 = vmatprep.subr.bf16.mxu0 %v3073_v25 }
 0x534   : > { %1739 = vmatpush1.bf16.msra.mxu0 %v2971_v30 }
 0x535   : > { %1740 = vmatprep.subr.bf16.mxu0 %v3073_v25 }
 0x538   : > { %1741 = vmatpush1.bf16.msra.mxu0 %v2972_v34 }
 0x539   : > { %1868 = vmatprep.subr.bf16.mxu0 %v3073_v25 }
 0x5be   : > { %v1302_v13 = vpop.f32.mrb[4].mxu0 }
 0x5bf   : > { %v1304_v14 = vpop.f32.mrb[5].mxu0  ;;  %v1303_v23 = vadd.f32 %v2662_v21, %v1302_v13 }
 0x5c0   : > { %v1305_v15 = vpop.f32.mrb[6].mxu0 }
 0x5c1   : > { %v1307_v16 = vpop.f32.mrb[7].mxu0  ;;  %v1306_v26 = vadd.f32 %v2662_v21, %v1305_v15  ;;  %v2985_v21 = vld [vmem:[#allocation5 + $0x290] sm:$0xff]  }
 0x5c4   : > { %v1594_v17 = vpop.f32.mrb[4].mxu1 }
 0x5c5   : > { %v1596_v18 = vpop.f32.mrb[5].mxu1 }
 0x5c6   : > { %v1597_v19 = vpop.f32.mrb[6].mxu1 }
 0x5c7   : > { %v1599_v20 = vpop.f32.mrb[7].mxu1 }
 0x5c8   : > { %v2984_v20 = vld [vmem:[#allocation5 + $0x288] sm:$0xff]  }
 0x5e6   : > { %v1448_v24 = vpop.f32.mrb[8].mxu0 }
 0x5e7   : > { %v1455_v27 = vadd.f32 %v1448_v24, %v1303_v23  ;;  %v1450_v28 = vpop.f32.mrb[9].mxu0  ;;  %v2987_v23 = vld [vmem:[#allocation5 + $0x2a0] sm:$0xff]   ;;  %v2988_v24 = vld [vmem:[#allocation5 + $0x2a8] sm:$0xff]  }
 0x5e8   : > { %v1451_v29 = vpop.f32.mrb[10].mxu0 }
 0x5e9   : > { %v1601_v31 = vadd.f32 %v1594_v17, %v1455_v27  ;;  %v1456_v32 = vadd.f32 %v1451_v29, %v1306_v26  ;;  %v1453_v33 = vpop.f32.mrb[11].mxu0  ;;  %v2983_v17 = vld [vmem:[#allocation5 + $0x280] sm:$0xff]   ;;  %v2989_v26 = vld [vmem:[#allocation5 + $0x2b0] sm:$0xff]   ;;  %v2990_v27 = vld [vmem:[#allocation5 + $0x2b8] sm:$0xff]  }
 0x5ea   : > { %v2991_v29 = vld [vmem:[#allocation5 + $0x2c0] sm:$0xff]   ;;  %v2992_v33 = vld [vmem:[#allocation5 + $0x2c8] sm:$0xff]  }
 0x5eb   : > { %v3404_v35 = vadd.f32 %v1601_v31, %v3288_v44  ;;  %v1602_v36 = vadd.f32 %v1597_v19, %v1456_v32 }
 0x5ed   : > { %v3408_v37 = vadd.f32 %v1602_v36, %v3295_v51  ;;  %v1605_v38 = vmax.f32 %v3404_v35, 0.0 }
 0x5ef   : > { %v1606_v39 = vmax.f32 %v3408_v37, 0.0  ;;  %v1609_v40 = vrot.slane %v1605_v38, 6 }
 0x5f1   : > { %1612 = vrot.lane.b32.xlu1 %v1609_v40, %s3074_s6  ;;  %v1610_v41 = vrot.slane %v1606_v39, 6  ;;  %v2993_v39 = vld [vmem:[#allocation5 + $0x2d0] sm:$0xff]  }
 0x5f2   : > { %2175 = vmatpush1.bf16.msra.mxu1 %v2993_v39 }
 0x5f3   : > { %v1611_v44 = vsel %vm697_vm14, %v1609_v40, %v1610_v41  ;;  %v2994_v40 = vld [vmem:[#allocation5 + $0x2d8] sm:$0xff]   ;;  %2176 = vmatprep.subr.bf16.mxu1 %v3073_v25 }
 0x5f4   : > { %1614 = vrot.lane.b32.xlu0 %v1611_v44, %s3074_s6  ;;  %v2996_v44 = vld [vmem:[#allocation5 + $0x2e8] sm:$0xff]  }
 0x5f5   : > { %1616 = vrot.lane.b32.xlu1 %v1610_v41, %s3074_s6  ;;  %v2995_v41 = vld [vmem:[#allocation5 + $0x2e0] sm:$0xff]  }
 0x5f6   : > { %2177 = vmatpush1.bf16.msra.mxu1 %v2994_v40 }
 0x5f7   : > { %2178 = vmatprep.subr.bf16.mxu1 %v3073_v25 }
 0x5fa   : > { %2179 = vmatpush1.bf16.msra.mxu1 %v2995_v41  ;;  %v3014_v41 = vld [vmem:[#allocation5 + $0x378] sm:$0xff]  }
 0x5fb   : > { %2180 = vmatprep.subr.bf16.mxu1 %v3073_v25 }
 0x5fe   : > { %2181 = vmatpush1.bf16.msra.mxu1 %v2996_v44  ;;  %v3015_v44 = vld [vmem:[#allocation5 + $0x380] sm:$0xff]  }
 0x5ff   : > { %2182 = vmatprep.subr.bf16.mxu1 %v3073_v25 }
 0x663   : > { %v1613_v42 = vpop.permute.xlu1 %1612 }
 0x664   : > { %1621 = vst.msk [vmem:[#allocation4] sm:$0xfc] %vm710_vm15, %v1613_v42 }
 0x665   : > { %1622 = vst.msk [vmem:[#allocation4 + $0x8] sm:$0xfc] %vm681_vm4, %v1613_v42  ;;  %v2997_v42 = vld [vmem:[#allocation5 + $0x2f0] sm:$0xff]  }
 0x666   : > { %v1615_v51 = vpop.permute.xlu0 %1614  ;;  %2183 = vmatpush1.bf16.msra.mxu1 %v2997_v42  ;;  %v3016_v42 = vld [vmem:[#allocation5 + $0x388] sm:$0xff]  }
 0x667   : > { %1623 = vst.msk [vmem:[#allocation4 + $0x10] sm:$0xff] %vm713_vm1, %v1615_v51  ;;  %v1617_v43 = vpop.permute.xlu1 %1616  ;;  %2184 = vmatprep.subr.bf16.mxu1 %v3073_v25 }
 0x668   : > { %1624 = vst.msk [vmem:[#allocation4 + $0x18] sm:$0xff] %vm683_vm11, %v1615_v51  ;;  %v2998_v51 = vld [vmem:[#allocation5 + $0x2f8] sm:$0xff]  }
 0x669   : > { %1625 = vst.msk [vmem:[#allocation4 + $0x20] sm:$0x3] %vm716_vm0, %v1617_v43 }
 0x66a   : > { %1626 = vst.msk [vmem:[#allocation4 + $0x28] sm:$0x3] %vm685_vm7, %v1617_v43  ;;  %2185 = vmatpush1.bf16.msra.mxu1 %v2998_v51  ;;  %v2999_v43 = vld [vmem:[#allocation5 + $0x300] sm:$0xff]   ;;  %v3017_v51 = vld [vmem:[#allocation5 + $0x390] sm:$0xff]  }
 0x66b   : > { %v1628_v46 = vld [vmem:[#allocation4] sm:$0xff]  ;;  %2186 = vmatprep.subr.bf16.mxu1 %v3073_v25 }
 0x66c   : > { %v1629_v45 = vld [vmem:[#allocation4 + $0x8] sm:$0xff]  ;;  %v1763_v6 = vld [vmem:[#allocation4] sm:$0xfc] }
 0x66d   : > { %v1764_v49 = vld [vmem:[#allocation4 + $0x8] sm:$0xfc]  ;;  %v1911_v30 = vld [vmem:[#allocation4] sm:$0xf0] }
 0x66e   : > { %v3423_v48 = vld [vmem:[#allocation4 + $0x10] sm:$0xff]  ;;  %v1912_v9 = vld [vmem:[#allocation4 + $0x8] sm:$0xf0]  ;;  %2187 = vmatpush1.bf16.msra.mxu1 %v2999_v43 }
 0x66f   : > { %v1631_v47 = vld [vmem:[#allocation4 + $0x18] sm:$0xff]  ;;  %v1632_v52 = vpack.c.bf16 %v3423_v48, %v1628_v46  ;;  %v1769_v7 = vpack.c.bf16 %v3423_v48, %v1763_v6  ;;  %v1915_v31 = vpack.c.bf16 %v3423_v48, %v1911_v30  ;;  %2188 = vmatprep.subr.bf16.mxu1 %v3073_v25  ;;  %v3018_v43 = vld [vmem:[#allocation5 + $0x398] sm:$0xff]  }
 0x670   : > { %v1633_v50 = vpack.c.bf16 %v1631_v47, %v1629_v45  ;;  %v1770_v54 = vpack.c.bf16 %v1631_v47, %v1764_v49  ;;  %v1767_v3 = vld [vmem:[#allocation4 + $0x20] sm:$0x3]  ;;  %v1916_v10 = vpack.c.bf16 %v1631_v47, %v1912_v9  ;;  %v3000_v45 = vld [vmem:[#allocation5 + $0x308] sm:$0xff]   ;;  %v3002_v49 = vld [vmem:[#allocation5 + $0x318] sm:$0xff]  }
 0x671   : > { %v1768_v53 = vld [vmem:[#allocation4 + $0x28] sm:$0x3]  ;;  %v1771_v8 = vpack.c.bf16 %v1767_v3, %v1767_v3  ;;  %v1798_v13 = vrot.slane %v1769_v7, 1  ;;  %v1913_v28 = vld [vmem:[#allocation4 + $0x20] sm:$0xf]  ;;  %v1944_v34 = vrot.slane %v1915_v31, 2 }
 0x672   : > { %v1772_v55 = vpack.c.bf16 %v1768_v53, %v1768_v53  ;;  %2707 = vmatprep.mubr.msk.bf16.mxu0 %vm810_vm5, %v1633_v50  ;;  %v1801_v56 = vrot.slane %v1770_v54, 1  ;;  %v1914_v5 = vld [vmem:[#allocation4 + $0x28] sm:$0xf]  ;;  %v1947_v15 = vrot.slane %v1916_v10, 2  ;;  %v1917_v32 = vpack.c.bf16 %v1913_v28, %v1913_v28  ;;  %2189 = vmatpush1.bf16.msra.mxu1 %v3000_v45  ;;  %v2696_v46 = vld [vmem:[%s3525_s4 + $0x2] ss:$0 sm:$0xff] }
 0x673   : > { %1755 = vmatmul.mubr.bf16.vlgmr.msra.gmra.mrb[12].mxu0 %v1632_v52  ;;  %v1918_v11 = vpack.c.bf16 %v1914_v5, %v1914_v5  ;;  %v1799_v14 = vrot.slane %v1771_v8, 1  ;;  %2190 = vmatprep.subr.bf16.mxu1 %v3073_v25  ;;  %v3001_v47 = vld [vmem:[#allocation5 + $0x310] sm:$0xff]   ;;  %v3003_v7 = vld [vmem:[#allocation5 + $0x320] sm:$0xff]   ;;  %v3012_v31 = vld [vmem:[#allocation5 + $0x368] sm:$0xff]  }
 0x674   : > { %v1802_v57 = vrot.slane %v1772_v55, 1  ;;  %1869 = vmatpush1.bf16.msra.mxu0 %v2973_v0  ;;  %v1945_v36 = vrot.slane %v1917_v32, 2  ;;  %v3019_v45 = vld [vmem:[#allocation5 + $0x3a0] sm:$0xff]  }
 0x675   : > { %1870 = vmatprep.subr.bf16.mxu0 %v3073_v25  ;;  %v1948_v16 = vrot.slane %v1918_v11, 2  ;;  %v1800_v18 = vsel %vm595_vm2, %v1798_v13, %v1799_v14  ;;  %v3004_v13 = vld [vmem:[#allocation5 + $0x328] sm:$0xff]  }
 0x676   : > { %v1803_v59 = vsel %vm595_vm2, %v1801_v56, %v1802_v57  ;;  %v1946_v38 = vsel %vm622_vm3, %v1944_v34, %v1945_v36  ;;  %2191 = vmatpush1.bf16.msra.mxu1 %v3001_v47 }
 0x677   : > { %2718 = vmatprep.mubr.msk.bf16.mxu0 %vm810_vm5, %v1803_v59  ;;  %v1949_v19 = vsel %vm622_vm3, %v1947_v15, %v1948_v16  ;;  %2192 = vmatprep.subr.bf16.mxu1 %v3073_v25  ;;  %v3005_v15 = vld [vmem:[#allocation5 + $0x330] sm:$0xff]   ;;  %v3006_v16 = vld [vmem:[#allocation5 + $0x338] sm:$0xff]  }
 0x678   : > { %1871 = vmatpush1.bf16.msra.mxu0 %v2974_v58 }
 0x679   : > { %1872 = vmatprep.subr.bf16.mxu0 %v3073_v25 }
 0x67a   : > { %2193 = vmatpush1.bf16.msra.mxu1 %v3002_v49 }
 0x67b   : > { %2320 = vmatprep.subr.bf16.mxu1 %v3073_v25 }
 0x67c   : > { %1873 = vmatpush1.bf16.msra.mxu0 %v2975_v60 }
 0x67d   : > { %1874 = vmatprep.subr.bf16.mxu0 %v3073_v25 }
 0x680   : > { %1875 = vmatpush1.bf16.msra.mxu0 %v2976_v61 }
 0x681   : > { %1876 = vmatprep.subr.bf16.mxu0 %v3073_v25 }
 0x684   : > { %1877 = vmatpush1.bf16.msra.mxu0 %v2977_v62 }
 0x685   : > { %1878 = vmatprep.subr.bf16.mxu0 %v3073_v25 }
 0x688   : > { %1879 = vmatpush1.bf16.msra.mxu0 %v2978_v63 }
 0x689   : > { %1880 = vmatprep.subr.bf16.mxu0 %v3073_v25 }
 0x68c   : > { %1881 = vmatpush1.bf16.msra.mxu0 %v2979_v1 }
 0x68d   : > { %1882 = vmatprep.subr.bf16.mxu0 %v3073_v25 }
 0x690   : > { %1883 = vmatpush1.bf16.msra.mxu0 %v2980_v2 }
 0x691   : > { %1884 = vmatprep.subr.bf16.mxu0 %v3073_v25 }
 0x694   : > { %1885 = vmatpush1.bf16.msra.mxu0 %v2981_v4 }
 0x695   : > { %1886 = vmatprep.subr.bf16.mxu0 %v3073_v25 }
 0x698   : > { %1887 = vmatpush1.bf16.msra.mxu0 %v2982_v12 }
 0x699   : > { %2014 = vmatprep.subr.bf16.mxu0 %v3073_v25 }
 0x69b   : > { %1901 = vmatmul.mubr.bf16.vlgmr.msra.gmra.mrb[12].mxu0 %v1800_v18  ;;  %v3008_v18 = vld [vmem:[#allocation5 + $0x348] sm:$0xff]  }
 0x69c   : > { %2015 = vmatpush1.bf16.msra.mxu0 %v2983_v17  ;;  %2729 = vmatprep.mubr.msk.bf16.mxu0 %vm810_vm5, %v1949_v19  ;;  %v3007_v17 = vld [vmem:[#allocation5 + $0x340] sm:$0xff]   ;;  %v3009_v19 = vld [vmem:[#allocation5 + $0x350] sm:$0xff]  }
 0x69d   : > { %2016 = vmatprep.subr.bf16.mxu0 %v3073_v25 }
 0x6a0   : > { %2017 = vmatpush1.bf16.msra.mxu0 %v2984_v20  ;;  %v3010_v20 = vld [vmem:[#allocation5 + $0x358] sm:$0xff]  }
 0x6a1   : > { %2018 = vmatprep.subr.bf16.mxu0 %v3073_v25 }
 0x6a4   : > { %2019 = vmatpush1.bf16.msra.mxu0 %v2985_v21 }
 0x6a5   : > { %2020 = vmatprep.subr.bf16.mxu0 %v3073_v25 }
 0x6a8   : > { %2021 = vmatpush1.bf16.msra.mxu0 %v2986_v22  ;;  %v3011_v22 = vld [vmem:[#allocation5 + $0x360] sm:$0xff]  }
 0x6a9   : > { %2022 = vmatprep.subr.bf16.mxu0 %v3073_v25 }
 0x6ac   : > { %2023 = vmatpush1.bf16.msra.mxu0 %v2987_v23 }
 0x6ad   : > { %2024 = vmatprep.subr.bf16.mxu0 %v3073_v25 }
 0x6b0   : > { %2025 = vmatpush1.bf16.msra.mxu0 %v2988_v24 }
 0x6b1   : > { %2026 = vmatprep.subr.bf16.mxu0 %v3073_v25 }
 0x6b4   : > { %2027 = vmatpush1.bf16.msra.mxu0 %v2989_v26 }
 0x6b5   : > { %2028 = vmatprep.subr.bf16.mxu0 %v3073_v25 }
 0x6b8   : > { %2029 = vmatpush1.bf16.msra.mxu0 %v2990_v27 }
 0x6b9   : > { %2030 = vmatprep.subr.bf16.mxu0 %v3073_v25 }
 0x6bc   : > { %2031 = vmatpush1.bf16.msra.mxu0 %v2991_v29 }
 0x6bd   : > { %2032 = vmatprep.subr.bf16.mxu0 %v3073_v25 }
 0x6c0   : > { %2033 = vmatpush1.bf16.msra.mxu0 %v2992_v33 }
 0x6c3   : > { %2047 = vmatmul.mubr.bf16.vlgmr.msra.gmra.mrb[12].mxu0 %v1946_v38  ;;  %v3013_v38 = vld [vmem:[#allocation5 + $0x370] sm:$0xff]  }
 0x796   : > { %v2048_v48 = vpop.f32.mrb[12].mxu0 }
 0x797   : > { %v2832_v50 = vadd.f32 %v2696_v46, %v2048_v48  ;;  %v2050_v52 = vpop.f32.mrb[13].mxu0  ;;  %v3021_v48 = vld [vmem:[#allocation5 + $0x3b0] sm:$0xff]  }
 0x798   : > { %v2051_v0 = vpop.f32.mrb[14].mxu0 }
 0x799   : > { %v2057_v53 = vmax.f32 %v2832_v50, 0.0  ;;  %v2833_v54 = vadd.f32 %v2696_v46, %v2051_v0  ;;  %v2053_v55 = vpop.f32.mrb[15].mxu0  ;;  %v3020_v46 = vld [vmem:[#allocation5 + $0x3a8] sm:$0xff]   ;;  %v3022_v0 = vld [vmem:[#allocation5 + $0x3b8] sm:$0xff]  }
 0x79b   : > { %v2061_v56 = vrot.slane %v2057_v53, 6  ;;  %v2058_v57 = vmax.f32 %v2833_v54, 0.0 }
 0x79d   : > { %v2062_v58 = vrot.slane %v2058_v57, 6  ;;  %2064 = vrot.lane.b32.xlu0 %v2061_v56, %s3074_s6 }
 0x79f   : > { %v2063_v59 = vsel %vm697_vm14, %v2061_v56, %v2062_v58 }
 0x7a0   : > { %2066 = vrot.lane.b32.xlu1 %v2063_v59, %s3074_s6 }
 0x7a1   : > { %2068 = vrot.lane.b32.xlu0 %v2062_v58, %s3074_s6 }
 0x80f   : > { %v2065_v60 = vpop.permute.xlu0 %2064 }
 0x810   : > { %2073 = vst.msk [vmem:[#allocation4] sm:$0xfc] %vm710_vm15, %v2065_v60 }
 0x811   : > { %2074 = vst.msk [vmem:[#allocation4 + $0x8] sm:$0xfc] %vm681_vm4, %v2065_v60  ;;  %v2730_v60 = vld [vmem:[%s3525_s4 + $0x3] ss:$0 sm:$0xff] }
 0x812   : > { %v2067_v61 = vpop.permute.xlu1 %2066 }
 0x813   : > { %2075 = vst.msk [vmem:[#allocation4 + $0x10] sm:$0xff] %vm713_vm1, %v2067_v61  ;;  %v2069_v62 = vpop.permute.xlu0 %2068 }
 0x814   : > { %2076 = vst.msk [vmem:[#allocation4 + $0x18] sm:$0xff] %vm683_vm11, %v2067_v61 }
 0x815   : > { %2077 = vst.msk [vmem:[#allocation4 + $0x20] sm:$0x3] %vm716_vm0, %v2069_v62 }
 0x816   : > { %2078 = vst.msk [vmem:[#allocation4 + $0x28] sm:$0x3] %vm685_vm7, %v2069_v62 }
 0x817   : > { %v2080_v1 = vld [vmem:[#allocation4] sm:$0xff] }
 0x818   : > { %v2081_v63 = vld [vmem:[#allocation4 + $0x8] sm:$0xff]  ;;  %v2215_v24 = vld [vmem:[#allocation4] sm:$0xfc] }
 0x819   : > { %v2216_v4 = vld [vmem:[#allocation4 + $0x8] sm:$0xfc]  ;;  %v2363_v49 = vld [vmem:[#allocation4] sm:$0xf0] }
 0x81a   : > { %v3477_v3 = vld [vmem:[#allocation4 + $0x10] sm:$0xff]  ;;  %v2364_v28 = vld [vmem:[#allocation4 + $0x8] sm:$0xf0] }
 0x81b   : > { %v2083_v2 = vld [vmem:[#allocation4 + $0x18] sm:$0xff]  ;;  %v2084_v6 = vpack.c.bf16 %v3477_v3, %v2080_v1  ;;  %v2221_v26 = vpack.c.bf16 %v3477_v3, %v2215_v24  ;;  %v2367_v50 = vpack.c.bf16 %v3477_v3, %v2363_v49 }
 0x81c   : > { %v2085_v5 = vpack.c.bf16 %v2083_v2, %v2081_v63  ;;  %v2222_v9 = vpack.c.bf16 %v2083_v2, %v2216_v4  ;;  %v2219_v21 = vld [vmem:[#allocation4 + $0x20] sm:$0x3]  ;;  %v2368_v29 = vpack.c.bf16 %v2083_v2, %v2364_v28 }
 0x81d   : > { %v2220_v8 = vld [vmem:[#allocation4 + $0x28] sm:$0x3]  ;;  %v2223_v27 = vpack.c.bf16 %v2219_v21, %v2219_v21  ;;  %v2250_v32 = vrot.slane %v2221_v26, 1  ;;  %v2365_v47 = vld [vmem:[#allocation4 + $0x20] sm:$0xf]  ;;  %v2396_v53 = vrot.slane %v2367_v50, 2 }
 0x81e   : > { %v2224_v10 = vpack.c.bf16 %v2220_v8, %v2220_v8  ;;  %2741 = vmatprep.mubr.msk.bf16.mxu1 %vm810_vm5, %v2085_v5  ;;  %v2253_v11 = vrot.slane %v2222_v9, 1  ;;  %v2366_v23 = vld [vmem:[#allocation4 + $0x28] sm:$0xf]  ;;  %v2399_v34 = vrot.slane %v2368_v29, 2  ;;  %v2369_v52 = vpack.c.bf16 %v2365_v47, %v2365_v47 }
 0x81f   : > { %2207 = vmatmul.mubr.bf16.vlgmr.msra.gmra.mrb[8].mxu1 %v2084_v6  ;;  %v2370_v30 = vpack.c.bf16 %v2366_v23, %v2366_v23  ;;  %v2251_v33 = vrot.slane %v2223_v27, 1 }
 0x820   : > { %v2254_v12 = vrot.slane %v2224_v10, 1  ;;  %2321 = vmatpush1.bf16.msra.mxu1 %v3003_v7  ;;  %v2397_v54 = vrot.slane %v2369_v52, 2 }
 0x821   : > { %2322 = vmatprep.subr.bf16.mxu1 %v3073_v25  ;;  %v2400_v36 = vrot.slane %v2370_v30, 2  ;;  %v2252_v39 = vsel %vm595_vm2, %v2250_v32, %v2251_v33 }
 0x822   : > { %v2255_v14 = vsel %vm595_vm2, %v2253_v11, %v2254_v12  ;;  %v2398_v55 = vsel %vm622_vm3, %v2396_v53, %v2397_v54 }
 0x823   : > { %2752 = vmatprep.mubr.msk.bf16.mxu1 %vm810_vm5, %v2255_v14  ;;  %v2401_v40 = vsel %vm622_vm3, %v2399_v34, %v2400_v36 }
 0x824   : > { %2323 = vmatpush1.bf16.msra.mxu1 %v3004_v13 }
 0x825   : > { %2324 = vmatprep.subr.bf16.mxu1 %v3073_v25 }
 0x828   : > { %2325 = vmatpush1.bf16.msra.mxu1 %v3005_v15 }
 0x829   : > { %2326 = vmatprep.subr.bf16.mxu1 %v3073_v25 }
 0x82c   : > { %2327 = vmatpush1.bf16.msra.mxu1 %v3006_v16 }
 0x82d   : > { %2328 = vmatprep.subr.bf16.mxu1 %v3073_v25 }
 0x830   : > { %2329 = vmatpush1.bf16.msra.mxu1 %v3007_v17 }
 0x831   : > { %2330 = vmatprep.subr.bf16.mxu1 %v3073_v25 }
 0x834   : > { %2331 = vmatpush1.bf16.msra.mxu1 %v3008_v18 }
 0x835   : > { %2332 = vmatprep.subr.bf16.mxu1 %v3073_v25 }
 0x838   : > { %2333 = vmatpush1.bf16.msra.mxu1 %v3009_v19 }
 0x839   : > { %2334 = vmatprep.subr.bf16.mxu1 %v3073_v25 }
 0x83c   : > { %2335 = vmatpush1.bf16.msra.mxu1 %v3010_v20 }
 0x83d   : > { %2336 = vmatprep.subr.bf16.mxu1 %v3073_v25 }
 0x840   : > { %2337 = vmatpush1.bf16.msra.mxu1 %v3011_v22 }
 0x841   : > { %2338 = vmatprep.subr.bf16.mxu1 %v3073_v25 }
 0x844   : > { %2339 = vmatpush1.bf16.msra.mxu1 %v3012_v31 }
 0x845   : > { %2466 = vmatprep.subr.bf16.mxu1 %v3073_v25 }
 0x847   : > { %2353 = vmatmul.mubr.bf16.vlgmr.msra.gmra.mrb[12].mxu1 %v2252_v39 }
 0x848   : > { %2467 = vmatpush1.bf16.msra.mxu1 %v3013_v38  ;;  %2763 = vmatprep.mubr.msk.bf16.mxu1 %vm810_vm5, %v2401_v40 }
 0x849   : > { %2468 = vmatprep.subr.bf16.mxu1 %v3073_v25 }
 0x84c   : > { %2469 = vmatpush1.bf16.msra.mxu1 %v3014_v41 }
 0x84d   : > { %2470 = vmatprep.subr.bf16.mxu1 %v3073_v25 }
 0x850   : > { %2471 = vmatpush1.bf16.msra.mxu1 %v3015_v44 }
 0x851   : > { %2472 = vmatprep.subr.bf16.mxu1 %v3073_v25 }
 0x854   : > { %2473 = vmatpush1.bf16.msra.mxu1 %v3016_v42 }
 0x855   : > { %2474 = vmatprep.subr.bf16.mxu1 %v3073_v25 }
 0x858   : > { %2475 = vmatpush1.bf16.msra.mxu1 %v3017_v51 }
 0x859   : > { %2476 = vmatprep.subr.bf16.mxu1 %v3073_v25 }
 0x85c   : > { %2477 = vmatpush1.bf16.msra.mxu1 %v3018_v43 }
 0x85d   : > { %2478 = vmatprep.subr.bf16.mxu1 %v3073_v25 }
 0x860   : > { %2479 = vmatpush1.bf16.msra.mxu1 %v3019_v45 }
 0x861   : > { %2480 = vmatprep.subr.bf16.mxu1 %v3073_v25 }
 0x864   : > { %2481 = vmatpush1.bf16.msra.mxu1 %v3020_v46 }
 0x865   : > { %2482 = vmatprep.subr.bf16.mxu1 %v3073_v25 }
 0x868   : > { %2483 = vmatpush1.bf16.msra.mxu1 %v3021_v48 }
 0x869   : > { %2484 = vmatprep.subr.bf16.mxu1 %v3073_v25 }
 0x86c   : > { %2485 = vmatpush1.bf16.msra.mxu1 %v3022_v0 }
 0x86f   : > { %2499 = vmatmul.mubr.bf16.vlgmr.msra.gmra.mrb[16].mxu1 %v2398_v55 }
 0x8f2   : > { %v2208_v56 = vpop.f32.mrb[8].mxu1 }
 0x8f3   : > { %v2210_v57 = vpop.f32.mrb[9].mxu1  ;;  %v2209_v61 = vadd.f32 %v2730_v60, %v2208_v56 }
 0x8f4   : > { %v2211_v58 = vpop.f32.mrb[10].mxu1 }
 0x8f5   : > { %v2213_v59 = vpop.f32.mrb[11].mxu1  ;;  %v2212_v63 = vadd.f32 %v2730_v60, %v2211_v58 }
 0x91a   : > { %v2354_v62 = vpop.f32.mrb[12].mxu1 }
 0x91b   : > { %v2361_v1 = vadd.f32 %v2354_v62, %v2209_v61  ;;  %v2356_v25 = vpop.f32.mrb[13].mxu1 }
 0x91c   : > { %v2357_v2 = vpop.f32.mrb[14].mxu1 }
 0x91d   : > { %v2362_v3 = vadd.f32 %v2357_v2, %v2212_v63  ;;  %v2359_v4 = vpop.f32.mrb[15].mxu1 }
 0x942   : > { %v2500_v5 = vpop.f32.mrb[16].mxu1 }
 0x943   : > { %v2507_v6 = vadd.f32 %v2500_v5, %v2361_v1  ;;  %v2502_v7 = vpop.f32.mrb[17].mxu1 }
 0x944   : > { %v2503_v8 = vpop.f32.mrb[18].mxu1 }
 0x945   : > { %v2509_v9 = vadd.f32 %v2507_v6, %v3404_v35  ;;  %v2508_v10 = vadd.f32 %v2503_v8, %v2362_v3  ;;  %v2505_v11 = vpop.f32.mrb[19].mxu1 }
 0x947   : > { %2511 = vst [vmem:[%s239_s20] sm:$0xff] %v2509_v9  ;;  %v2510_v12 = vadd.f32 %v2508_v10, %v3408_v37 }
 0x949   : > { %2512 = vst [vmem:[%s239_s20 + $0x8] sm:$0xff] %v2510_v12 }
 0x94a PF: > { %s16_s18 = sadd.s32 1, %s3061_s18  }
 0x94b   : > { %p13_p3 = scmp.ge.s32.totalorder %s16_s18, 4  }
 0x94d   :  { %15 = sbr.rel (!%p13_p3) target bundleno = 1 (0x1), region = 89 }
 0x954   :  { %2534 = vsyncpa [#allocation6], 1 }
 0x955   :  { %2536 = vsyncpa [#allocation6 + $0x1], 1 }

</bundles_post_ra>
